<compile_context>
chip_gen: v5e
topology: v5e:2x2
jax: 0.10.0
libtpu: 0.0.40
codegen_flags: <defaults>
</compile_context>

<pallas_src>
import functools

import jax
import jax.numpy as jnp
from jax import lax
from jax.experimental import pallas as pl
from jax.experimental.pallas import tpu as pltpu

_BN_EPS = 1e-5
_LANE = 128  # vreg lane width; channel dims are padded up to a multiple of this.


# ----------------------------------------------------------------------------
# Small helpers
# ----------------------------------------------------------------------------
def _round_up(n, m=_LANE):
    return ((n + m - 1) // m) * m


def _pad_tail(a, tail):
    """Zero-pad the trailing len(tail) dims of `a` up to `tail` (no-op if already)."""
    pads = [(0, 0)] * (a.ndim - len(tail))
    pads += [(0, t - s) for s, t in zip(a.shape[-len(tail):], tail)]
    if not any(p[1] for p in pads):
        return a
    return jnp.pad(a, pads)


def _fold_bn(w, b, bn, eps=_BN_EPS):
    """Fold eval-mode BatchNorm into a conv weight (..., cout) and bias (cout,)."""
    gamma, beta, mean, var = bn
    s = gamma / jnp.sqrt(var + eps)
    return w * s, (b - mean) * s + beta


def _vmem_limit_bytes():
    """Generation-specific scoped-VMEM budget (~3/4 of physical, capped at 100 MiB)."""
    try:
        cap = int(pltpu.get_tpu_info().vmem_capacity_bytes)
    except Exception:  # pragma: no cover - conservative fallback
        cap = 64 * 1024 * 1024
    return int(min(cap * 3 // 4, 100 * 1024 * 1024))


# ----------------------------------------------------------------------------
# Fused BottleneckD Pallas kernel (one grid step == one image)
# ----------------------------------------------------------------------------
def _make_block_kernel(h1, w1, cm_p, cout_p, down_sampling, compute_dtype, out_dtype):
    ho, wo = h1 - 2, w1 - 2

    def kernel(x_ref, w1b_ref, b1b_ref, w2_ref, b2_ref, w3_ref, b3_ref,
               out_ref, a1_ref, a2_ref):
        x2d = x_ref[...]                                          # (h1*w1, cin_p)

        # ---- conv1 (1x1; stride folded outside) + BN + ReLU, fused with the ----
        # ---- shortcut 1x1 conv + BN when down_sampling (one wider-N matmul) ----
        a0 = jnp.dot(x2d, w1b_ref[...], preferred_element_type=jnp.float32)
        a0 = a0 + b1b_ref[...]
        a1 = jnp.maximum(a0[:, :cm_p], 0.0).astype(compute_dtype)

        # Stage a1 in VMEM scratch so the 3x3 windows below are shifted ref loads,
        # not materialized value-slice copies.
        a1_ref[...] = a1.reshape(h1, w1, cm_p)

        # ---- conv2 (3x3, VALID) + BN + ReLU: nine shifted-window MXU matmuls ----
        acc = None
        for dy in range(3):
            for dx in range(3):
                patch = a1_ref[dy:dy + ho, dx:dx + wo, :].reshape(ho * wo, cm_p)
                part = jnp.dot(patch, w2_ref[dy * 3 + dx],
                               preferred_element_type=jnp.float32)
                acc = part if acc is None else acc + part
        a2 = jnp.maximum(acc + b2_ref[...], 0.0).astype(compute_dtype)

        # ---- conv3 (1x1, padding=1) + BN -------------------------------------
        # Stage a2 in a w1-wide scratch at column offset 1 with zero side columns:
        # conv3's output then already sits at its final w offsets, the missing top /
        # bottom border rows are added with a cheap major-dim concatenate of zero
        # rows, and the block output becomes ONE aligned lane-dense store.
        a2_ref[:, 0:1, :] = jnp.zeros((ho, 1, cm_p), compute_dtype)
        a2_ref[:, w1 - 1:w1, :] = jnp.zeros((ho, 1, cm_p), compute_dtype)
        a2_ref[:, 1:1 + wo, :] = a2.reshape(ho, wo, cm_p)
        inner = jnp.dot(a2_ref[...].reshape(ho * w1, cm_p), w3_ref[...],
                        preferred_element_type=jnp.float32)
        zrow = jnp.zeros((1, w1, cout_p), jnp.float32)
        inner_full = jnp.concatenate(
            [zrow, inner.reshape(ho, w1, cout_p), zrow], axis=0)  # (h1, w1, cout_p)

        # ---- path B (residual) -------------------------------------------------
        if down_sampling:
            res = a0[:, cm_p:]                     # shortcut conv + BN (bias folded)
        else:
            res = x2d.astype(jnp.float32)          # identity (cin_p == cout_p)

        # ---- assemble: border = relu(bias3 + res), interior adds conv3 ---------
        base = (res + b3_ref[...]).reshape(h1, w1, cout_p)
        out_ref[...] = jnp.maximum(base + inner_full, 0.0).astype(out_dtype)

    return kernel


def _fused_block_call(xs2d, w1b, b1b, w2, b2, w3, b3, *, h1, w1, down_sampling,
                      out_dtype):
    n, hw, cin_p = xs2d.shape
    compute_dtype = xs2d.dtype
    cm_p = w2.shape[1]
    cout_p = w3.shape[1]
    n1 = w1b.shape[1]
    kernel = _make_block_kernel(h1, w1, cm_p, cout_p, down_sampling,
                                compute_dtype, out_dtype)

    # Weights / biases have constant index maps -> DMA'd once, VMEM-resident.
    in_specs = [
        pl.BlockSpec((None, hw, cin_p), lambda b: (b, 0, 0)),   # per-image activations
        pl.BlockSpec((cin_p, n1), lambda b: (0, 0)),            # conv1 (+shortcut) wgt
        pl.BlockSpec((1, n1), lambda b: (0, 0)),                # conv1 (+shortcut) bias
        pl.BlockSpec((9, cm_p, cm_p), lambda b: (0, 0, 0)),     # conv2 weight (9 taps)
        pl.BlockSpec((1, cm_p), lambda b: (0, 0)),              # conv2 folded bias
        pl.BlockSpec((cm_p, cout_p), lambda b: (0, 0)),         # conv3 weight
        pl.BlockSpec((1, cout_p), lambda b: (0, 0)),            # conv3 folded bias
    ]

    return pl.pallas_call(
        kernel,
        out_shape=jax.ShapeDtypeStruct((n, h1, w1, cout_p), out_dtype),
        grid_spec=pltpu.PrefetchScalarGridSpec(
            num_scalar_prefetch=0,
            grid=(n,),                       # one grid step per image; "parallel"
            in_specs=in_specs,               # keeps both v7x TensorCores busy (N>=2)
            out_specs=pl.BlockSpec((None, h1, w1, cout_p), lambda b: (b, 0, 0, 0)),
            scratch_shapes=[
                pltpu.VMEM((h1, w1, cm_p), compute_dtype),        # a1 (conv2 windows)
                pltpu.VMEM((h1 - 2, w1, cm_p), compute_dtype),    # a2 (w1-wide stage)
            ],
        ),
        compiler_params=pltpu.CompilerParams(
            dimension_semantics=("parallel",),
            vmem_limit_bytes=_vmem_limit_bytes(),
        ),
    )(xs2d, w1b, b1b, w2, b2, w3, b3)


# ----------------------------------------------------------------------------
# Forward passes
# ----------------------------------------------------------------------------
def bottleneck_d_forward_nhwc(x, params, *, stride=1, down_sampling=False,
                              compute_dtype=jnp.bfloat16, out_dtype=jnp.bfloat16):
    """Fused BottleneckD forward.  x: (N, H, W, Cin) -> (N, H/stride, W/stride, Cout)."""
    n, h, w, cin = x.shape
    cm = params["w1"].shape[1]
    cout = params["w3"].shape[1]
    assert cin == params["w1"].shape[0], \
        f"input channels {cin} != conv1 in-channels {params['w1'].shape[0]}"
    if not down_sampling:
        assert stride == 1, "identity shortcut requires stride == 1"
        assert cin == cout, "identity shortcut requires matching channel counts"

    # AvgPool2d(kernel=1, stride) and conv1's stride are both the same top-left
    # spatial subsample; path A and path B share it.
    xs = x if stride == 1 else x[:, ::stride, ::stride, :]
    _, h1, w1, _ = xs.shape
    assert h1 >= 3 and w1 >= 3, "3x3 VALID conv needs spatial extent >= 3 after stride"

    # Lane-dense channel padding (no-op for real ResNet channel counts >= 128).
    cin_p, cm_p, cout_p = _round_up(cin), _round_up(cm), _round_up(cout)

    # Fold eval-mode BN into the convs; pad channels; bf16 weights, f32 folded biases.
    wc1, bc1 = _fold_bn(params["w1"], params["b1"], params["bn1"])
    wc2, bc2 = _fold_bn(params["w2"], params["b2"], params["bn2"])
    wc3, bc3 = _fold_bn(params["w3"], params["b3"], params["bn3"])
    if down_sampling:
        wcb, bcb = _fold_bn(params["wB"], params["bB"], params["bnB"])
        w1b = jnp.concatenate([_pad_tail(wc1, (cin_p, cm_p)),
                               _pad_tail(wcb, (cin_p, cout_p))], axis=1)
        b1b = jnp.concatenate([_pad_tail(bc1, (cm_p,)), _pad_tail(bcb, (cout_p,))])
    else:
        w1b = _pad_tail(wc1, (cin_p, cm_p))
        b1b = _pad_tail(bc1, (cm_p,))
    w1b = w1b.astype(compute_dtype)
    b1b = b1b.reshape(1, -1).astype(jnp.float32)
    w2 = _pad_tail(wc2.reshape(9, cm, cm), (cm_p, cm_p)).astype(compute_dtype)
    b2 = _pad_tail(bc2, (cm_p,)).reshape(1, cm_p).astype(jnp.float32)
    w3 = _pad_tail(wc3, (cm_p, cout_p)).astype(compute_dtype)
    b3 = _pad_tail(bc3, (cout_p,)).reshape(1, cout_p).astype(jnp.float32)

    # Flatten spatial into the matmul M dimension (contiguous, metadata-only reshape).
    xs2d = _pad_tail(xs, (cin_p,)).astype(compute_dtype).reshape(n, h1 * w1, cin_p)

    out = _fused_block_call(xs2d, w1b, b1b, w2, b2, w3, b3, h1=h1, w1=w1,
                            down_sampling=down_sampling, out_dtype=out_dtype)
    if cout_p != cout:
        out = out[..., :cout]
    return out


def bottleneck_d_forward(x_nchw, params, *, stride=1, down_sampling=False,
                         expansion=4, compute_dtype=jnp.bfloat16,
                         out_dtype=jnp.float32):
    """NCHW wrapper matching the PyTorch module interface (f32 output by default)."""
    del expansion  # implied by the parameter shapes
    x = jnp.transpose(x_nchw, (0, 2, 3, 1))                  # -> NHWC
    out = bottleneck_d_forward_nhwc(x, params, stride=stride,
                                    down_sampling=down_sampling,
                                    compute_dtype=compute_dtype,
                                    out_dtype=out_dtype)
    return jnp.transpose(out, (0, 3, 1, 2))                  # -> NCHW


# ----------------------------------------------------------------------------
# Deterministic synthetic parameters (conv weights + eval-mode BN stats)
# ----------------------------------------------------------------------------
def make_params(key, in_channels, out_channels, expansion, stride, down_sampling):
    cin_eff = in_channels * stride if down_sampling else in_channels * expansion
    cm = out_channels
    cout = out_channels * expansion
    keys = jax.random.split(key, 12)

    def bn_params(k, c):
        k1, k2, k3, k4 = jax.random.split(k, 4)
        gamma = jax.random.uniform(k1, (c,), minval=0.5, maxval=1.5)
        beta = jax.random.normal(k2, (c,)) * 0.1
        mean = jax.random.normal(k3, (c,)) * 0.1
        var = jax.random.uniform(k4, (c,), minval=0.5, maxval=1.5)
        return tuple(p.astype(jnp.float32) for p in (gamma, beta, mean, var))

    p = {}
    p["w1"] = (jax.random.normal(keys[0], (cin_eff, cm)) * 0.1).astype(jnp.float32)
    p["b1"] = (jax.random.normal(keys[1], (cm,)) * 0.1).astype(jnp.float32)
    p["bn1"] = bn_params(keys[2], cm)
    p["w2"] = (jax.random.normal(keys[3], (3, 3, cm, cm)) * 0.1).astype(jnp.float32)
    p["b2"] = (jax.random.normal(keys[4], (cm,)) * 0.1).astype(jnp.float32)
    p["bn2"] = bn_params(keys[5], cm)
    p["w3"] = (jax.random.normal(keys[6], (cm, cout)) * 0.1).astype(jnp.float32)
    p["b3"] = (jax.random.normal(keys[7], (cout,)) * 0.1).astype(jnp.float32)
    p["bn3"] = bn_params(keys[8], cout)
    if down_sampling:
        p["wB"] = (jax.random.normal(keys[9], (cin_eff, cout)) * 0.1).astype(jnp.float32)
        p["bB"] = (jax.random.normal(keys[10], (cout,)) * 0.1).astype(jnp.float32)
        p["bnB"] = bn_params(keys[11], cout)
    return p


# ----------------------------------------------------------------------------
# Pure-JAX f32 reference (same eval-mode BN semantics) for verification
# ----------------------------------------------------------------------------
def reference_forward(x_nchw, params, *, stride, down_sampling):
    x = jnp.transpose(x_nchw, (0, 2, 3, 1)).astype(jnp.float32)

    def bn(z, p):
        g, b, m, v = p
        return (z - m) / jnp.sqrt(v + _BN_EPS) * g + b

    def conv(z, w_hwio, b, strides=(1, 1), padding="VALID"):
        return lax.conv_general_dilated(
            z, w_hwio, strides, padding,
            dimension_numbers=("NHWC", "HWIO", "NHWC"),
            precision=lax.Precision.HIGHEST) + b

    a = jnp.maximum(bn(conv(x, params["w1"][None, None], params["b1"],
                            (stride, stride)), params["bn1"]), 0.0)
    a = jnp.maximum(bn(conv(a, params["w2"], params["b2"]), params["bn2"]), 0.0)
    a = bn(conv(a, params["w3"][None, None], params["b3"],
                padding=((1, 1), (1, 1))), params["bn3"])
    if down_sampling:
        y = x[:, ::stride, ::stride, :]
        y = bn(conv(y, params["wB"][None, None], params["bB"]), params["bnB"])
    else:
        y = x
    out = jnp.maximum(a + y, 0.0)
    return jnp.transpose(out, (0, 3, 1, 2))


# ----------------------------------------------------------------------------
if __name__ == "__main__":
    key = jax.random.PRNGKey(0)
    kx, kx2, kp1, kp2 = jax.random.split(key, 4)

    # Case 1: residual block (identity shortcut), stride=1.
    in_ch, out_ch, exp = 4, 4, 4
    x = jax.random.normal(kx, (2, in_ch * exp, 8, 8), dtype=jnp.float32)
    p1 = make_params(kp1, in_ch, out_ch, exp, stride=1, down_sampling=False)
    ref1 = reference_forward(x, p1, stride=1, down_sampling=False)

    # Case 2: down-sampling block, stride=2.
    in_ch2, stride2 = 8, 2
    x2 = jax.random.normal(kx2, (2, in_ch2 * stride2, 8, 8), dtype=jnp.float32)
    p2 = make_params(kp2, in_ch2, out_ch, exp, stride=stride2, down_sampling=True)
    ref2 = reference_forward(x2, p2, stride=stride2, down_sampling=True)

    cases = [
        ("residual", x, p1, ref1,
         dict(stride=1, down_sampling=False), (2, out_ch * exp, 8, 8)),
        ("down-sampling", x2, p2, ref2,
         dict(stride=stride2, down_sampling=True), (2, out_ch * exp, 4, 4)),
    ]

    # f32 compute -> tight numerical check; bf16 compute (production setting) -> a
    # tolerance appropriate for bf16 inputs/weights with f32 accumulation.
    for cdt, tol in ((jnp.float32, 2e-3), (jnp.bfloat16, 1e-1)):
        for name, xin, prm, ref, kw, shape in cases:
            fwd = jax.jit(functools.partial(bottleneck_d_forward,
                                            compute_dtype=cdt, **kw))
            out = jax.block_until_ready(fwd(xin, prm))
            assert out.shape == shape, (name, out.shape)
            assert bool(jnp.allclose(out, ref, atol=tol, rtol=tol)), \
                f"{name} block mismatch (compute_dtype={jnp.dtype(cdt).name})"

    # Smoke-test the NHWC chaining path with its bf16 output default.
    out_nhwc = jax.block_until_ready(
        bottleneck_d_forward_nhwc(jnp.transpose(x, (0, 2, 3, 1)), p1))
    assert out_nhwc.shape == (2, 8, 8, out_ch * exp)
    assert out_nhwc.dtype == jnp.bfloat16

    print("KERNEL_OK")
</pallas_src>

<mosaic_0001>
module attributes {stable_mosaic.version = 11 : i64} {
  func.func @kernel(%arg0: i32, %arg1: memref<1x64x128xf32, #tpu.memory_space<vmem>>, %arg2: memref<128x128xf32, #tpu.memory_space<vmem>>, %arg3: memref<1x128xf32, #tpu.memory_space<vmem>>, %arg4: memref<9x128x128xf32, #tpu.memory_space<vmem>>, %arg5: memref<1x128xf32, #tpu.memory_space<vmem>>, %arg6: memref<128x128xf32, #tpu.memory_space<vmem>>, %arg7: memref<1x128xf32, #tpu.memory_space<vmem>>, %arg8: memref<1x8x8x128xf32, #tpu.memory_space<vmem>>, %arg9: memref<8x8x128xf32, #tpu.memory_space<vmem>>, %arg10: memref<6x8x128xf32, #tpu.memory_space<vmem>>) attributes {dimension_semantics = [#tpu.dimension_semantics<parallel>], iteration_bounds = array<i64: 2>, scalar_prefetch = 0 : i64, scratch_operands = 2 : i64, tpu.core_type = #tpu.core_type<tc>, window_params = [{transform_indices = @transform_0, window_bounds = array<i64: 1, 64, 128>}, {pipeline_mode = #tpu.pipeline_mode<synchronous>, transform_indices = @transform_1, window_bounds = array<i64: 128, 128>}, {pipeline_mode = #tpu.pipeline_mode<synchronous>, transform_indices = @transform_2, window_bounds = array<i64: 1, 128>}, {pipeline_mode = #tpu.pipeline_mode<synchronous>, transform_indices = @transform_3, window_bounds = array<i64: 9, 128, 128>}, {pipeline_mode = #tpu.pipeline_mode<synchronous>, transform_indices = @transform_4, window_bounds = array<i64: 1, 128>}, {pipeline_mode = #tpu.pipeline_mode<synchronous>, transform_indices = @transform_5, window_bounds = array<i64: 128, 128>}, {pipeline_mode = #tpu.pipeline_mode<synchronous>, transform_indices = @transform_6, window_bounds = array<i64: 1, 128>}, {transform_indices = @transform_7, window_bounds = array<i64: 1, 8, 8, 128>}]} {
    %c0 = arith.constant 0 : index
    %c0_0 = arith.constant 0 : index
    %c0_1 = arith.constant 0 : index
    %0 = vector.load %arg1[%c0, %c0_0, %c0_1] : memref<1x64x128xf32, #tpu.memory_space<vmem>>, vector<1x64x128xf32>
    %1 = vector.shape_cast %0 : vector<1x64x128xf32> to vector<64x128xf32>
    %c0_2 = arith.constant 0 : index
    %c0_3 = arith.constant 0 : index
    %2 = vector.load %arg2[%c0_2, %c0_3] : memref<128x128xf32, #tpu.memory_space<vmem>>, vector<128x128xf32>
    %cst = arith.constant dense<0.000000e+00> : vector<64x128xf32>
    %3 = tpu.matmul %1, %2, %cst {dimension_numbers = #tpu.dot_dimension_numbers<[1], [0], [0], [1], [0, 0, 1, 1], [], []>} : vector<64x128xf32>, vector<128x128xf32>, vector<64x128xf32> -> vector<64x128xf32>
    %c0_4 = arith.constant 0 : index
    %c0_5 = arith.constant 0 : index
    %4 = vector.load %arg3[%c0_4, %c0_5] : memref<1x128xf32, #tpu.memory_space<vmem>>, vector<1x128xf32>
    %5 = vector.broadcast %4 : vector<1x128xf32> to vector<64x128xf32>
    %6 = arith.addf %3, %5 : vector<64x128xf32>
    %cst_6 = arith.constant 0.000000e+00 : f32
    %7 = vector.broadcast %cst_6 : f32 to vector<64x128xf32>
    %8 = arith.maximumf %6, %7 : vector<64x128xf32>
    %9 = vector.shape_cast %8 : vector<64x128xf32> to vector<8x8x128xf32>
    %c0_7 = arith.constant 0 : index
    %c0_8 = arith.constant 0 : index
    %c0_9 = arith.constant 0 : index
    %10 = vector.load %arg9[%c0_7, %c0_8, %c0_9] : memref<8x8x128xf32, #tpu.memory_space<vmem>>, vector<8x8x128xf32>
    tpu.vector_store %arg9[%c0_7, %c0_8, %c0_9], %9 {strides = array<i32>} : memref<8x8x128xf32, #tpu.memory_space<vmem>>, vector<8x8x128xf32>,
    %c0_10 = arith.constant 0 : index
    %c0_11 = arith.constant 0 : index
    %c0_12 = arith.constant 0 : index
    %11 = vector.load %arg9[%c0_10, %c0_11, %c0_12] : memref<8x8x128xf32, #tpu.memory_space<vmem>>, vector<6x6x128xf32>
    %12 = vector.shape_cast %11 : vector<6x6x128xf32> to vector<36x128xf32>
    %c0_13 = arith.constant 0 : index
    %c0_14 = arith.constant 0 : index
    %c0_15 = arith.constant 0 : index
    %13 = vector.load %arg4[%c0_13, %c0_14, %c0_15] : memref<9x128x128xf32, #tpu.memory_space<vmem>>, vector<1x128x128xf32>
    %14 = vector.shape_cast %13 : vector<1x128x128xf32> to vector<128x128xf32>
    %cst_16 = arith.constant dense<0.000000e+00> : vector<36x128xf32>
    %15 = tpu.matmul %12, %14, %cst_16 {dimension_numbers = #tpu.dot_dimension_numbers<[1], [0], [0], [1], [0, 0, 1, 1], [], []>} : vector<36x128xf32>, vector<128x128xf32>, vector<36x128xf32> -> vector<36x128xf32>
    %c0_17 = arith.constant 0 : index
    %c1 = arith.constant 1 : index
    %c0_18 = arith.constant 0 : index
    %16 = vector.load %arg9[%c0_17, %c1, %c0_18] : memref<8x8x128xf32, #tpu.memory_space<vmem>>, vector<6x6x128xf32>
    %17 = vector.shape_cast %16 : vector<6x6x128xf32> to vector<36x128xf32>
    %c1_19 = arith.constant 1 : index
    %c0_20 = arith.constant 0 : index
    %c0_21 = arith.constant 0 : index
    %18 = vector.load %arg4[%c1_19, %c0_20, %c0_21] : memref<9x128x128xf32, #tpu.memory_space<vmem>>, vector<1x128x128xf32>
    %19 = vector.shape_cast %18 : vector<1x128x128xf32> to vector<128x128xf32>
    %cst_22 = arith.constant dense<0.000000e+00> : vector<36x128xf32>
    %20 = tpu.matmul %17, %19, %cst_22 {dimension_numbers = #tpu.dot_dimension_numbers<[1], [0], [0], [1], [0, 0, 1, 1], [], []>} : vector<36x128xf32>, vector<128x128xf32>, vector<36x128xf32> -> vector<36x128xf32>
    %21 = arith.addf %15, %20 : vector<36x128xf32>
    %c0_23 = arith.constant 0 : index
    %c2 = arith.constant 2 : index
    %c0_24 = arith.constant 0 : index
    %22 = vector.load %arg9[%c0_23, %c2, %c0_24] : memref<8x8x128xf32, #tpu.memory_space<vmem>>, vector<6x6x128xf32>
    %23 = vector.shape_cast %22 : vector<6x6x128xf32> to vector<36x128xf32>
    %c2_25 = arith.constant 2 : index
    %c0_26 = arith.constant 0 : index
    %c0_27 = arith.constant 0 : index
    %24 = vector.load %arg4[%c2_25, %c0_26, %c0_27] : memref<9x128x128xf32, #tpu.memory_space<vmem>>, vector<1x128x128xf32>
    %25 = vector.shape_cast %24 : vector<1x128x128xf32> to vector<128x128xf32>
    %cst_28 = arith.constant dense<0.000000e+00> : vector<36x128xf32>
    %26 = tpu.matmul %23, %25, %cst_28 {dimension_numbers = #tpu.dot_dimension_numbers<[1], [0], [0], [1], [0, 0, 1, 1], [], []>} : vector<36x128xf32>, vector<128x128xf32>, vector<36x128xf32> -> vector<36x128xf32>
    %27 = arith.addf %21, %26 : vector<36x128xf32>
    %c1_29 = arith.constant 1 : index
    %c0_30 = arith.constant 0 : index
    %c0_31 = arith.constant 0 : index
    %28 = vector.load %arg9[%c1_29, %c0_30, %c0_31] : memref<8x8x128xf32, #tpu.memory_space<vmem>>, vector<6x6x128xf32>
    %29 = vector.shape_cast %28 : vector<6x6x128xf32> to vector<36x128xf32>
    %c3 = arith.constant 3 : index
    %c0_32 = arith.constant 0 : index
    %c0_33 = arith.constant 0 : index
    %30 = vector.load %arg4[%c3, %c0_32, %c0_33] : memref<9x128x128xf32, #tpu.memory_space<vmem>>, vector<1x128x128xf32>
    %31 = vector.shape_cast %30 : vector<1x128x128xf32> to vector<128x128xf32>
    %cst_34 = arith.constant dense<0.000000e+00> : vector<36x128xf32>
    %32 = tpu.matmul %29, %31, %cst_34 {dimension_numbers = #tpu.dot_dimension_numbers<[1], [0], [0], [1], [0, 0, 1, 1], [], []>} : vector<36x128xf32>, vector<128x128xf32>, vector<36x128xf32> -> vector<36x128xf32>
    %33 = arith.addf %27, %32 : vector<36x128xf32>
    %c1_35 = arith.constant 1 : index
    %c1_36 = arith.constant 1 : index
    %c0_37 = arith.constant 0 : index
    %34 = vector.load %arg9[%c1_35, %c1_36, %c0_37] : memref<8x8x128xf32, #tpu.memory_space<vmem>>, vector<6x6x128xf32>
    %35 = vector.shape_cast %34 : vector<6x6x128xf32> to vector<36x128xf32>
    %c4 = arith.constant 4 : index
    %c0_38 = arith.constant 0 : index
    %c0_39 = arith.constant 0 : index
    %36 = vector.load %arg4[%c4, %c0_38, %c0_39] : memref<9x128x128xf32, #tpu.memory_space<vmem>>, vector<1x128x128xf32>
    %37 = vector.shape_cast %36 : vector<1x128x128xf32> to vector<128x128xf32>
    %cst_40 = arith.constant dense<0.000000e+00> : vector<36x128xf32>
    %38 = tpu.matmul %35, %37, %cst_40 {dimension_numbers = #tpu.dot_dimension_numbers<[1], [0], [0], [1], [0, 0, 1, 1], [], []>} : vector<36x128xf32>, vector<128x128xf32>, vector<36x128xf32> -> vector<36x128xf32>
    %39 = arith.addf %33, %38 : vector<36x128xf32>
    %c1_41 = arith.constant 1 : index
    %c2_42 = arith.constant 2 : index
    %c0_43 = arith.constant 0 : index
    %40 = vector.load %arg9[%c1_41, %c2_42, %c0_43] : memref<8x8x128xf32, #tpu.memory_space<vmem>>, vector<6x6x128xf32>
    %41 = vector.shape_cast %40 : vector<6x6x128xf32> to vector<36x128xf32>
    %c5 = arith.constant 5 : index
    %c0_44 = arith.constant 0 : index
    %c0_45 = arith.constant 0 : index
    %42 = vector.load %arg4[%c5, %c0_44, %c0_45] : memref<9x128x128xf32, #tpu.memory_space<vmem>>, vector<1x128x128xf32>
    %43 = vector.shape_cast %42 : vector<1x128x128xf32> to vector<128x128xf32>
    %cst_46 = arith.constant dense<0.000000e+00> : vector<36x128xf32>
    %44 = tpu.matmul %41, %43, %cst_46 {dimension_numbers = #tpu.dot_dimension_numbers<[1], [0], [0], [1], [0, 0, 1, 1], [], []>} : vector<36x128xf32>, vector<128x128xf32>, vector<36x128xf32> -> vector<36x128xf32>
    %45 = arith.addf %39, %44 : vector<36x128xf32>
    %c2_47 = arith.constant 2 : index
    %c0_48 = arith.constant 0 : index
    %c0_49 = arith.constant 0 : index
    %46 = vector.load %arg9[%c2_47, %c0_48, %c0_49] : memref<8x8x128xf32, #tpu.memory_space<vmem>>, vector<6x6x128xf32>
    %47 = vector.shape_cast %46 : vector<6x6x128xf32> to vector<36x128xf32>
    %c6 = arith.constant 6 : index
    %c0_50 = arith.constant 0 : index
    %c0_51 = arith.constant 0 : index
    %48 = vector.load %arg4[%c6, %c0_50, %c0_51] : memref<9x128x128xf32, #tpu.memory_space<vmem>>, vector<1x128x128xf32>
    %49 = vector.shape_cast %48 : vector<1x128x128xf32> to vector<128x128xf32>
    %cst_52 = arith.constant dense<0.000000e+00> : vector<36x128xf32>
    %50 = tpu.matmul %47, %49, %cst_52 {dimension_numbers = #tpu.dot_dimension_numbers<[1], [0], [0], [1], [0, 0, 1, 1], [], []>} : vector<36x128xf32>, vector<128x128xf32>, vector<36x128xf32> -> vector<36x128xf32>
    %51 = arith.addf %45, %50 : vector<36x128xf32>
    %c2_53 = arith.constant 2 : index
    %c1_54 = arith.constant 1 : index
    %c0_55 = arith.constant 0 : index
    %52 = vector.load %arg9[%c2_53, %c1_54, %c0_55] : memref<8x8x128xf32, #tpu.memory_space<vmem>>, vector<6x6x128xf32>
    %53 = vector.shape_cast %52 : vector<6x6x128xf32> to vector<36x128xf32>
    %c7 = arith.constant 7 : index
    %c0_56 = arith.constant 0 : index
    %c0_57 = arith.constant 0 : index
    %54 = vector.load %arg4[%c7, %c0_56, %c0_57] : memref<9x128x128xf32, #tpu.memory_space<vmem>>, vector<1x128x128xf32>
    %55 = vector.shape_cast %54 : vector<1x128x128xf32> to vector<128x128xf32>
    %cst_58 = arith.constant dense<0.000000e+00> : vector<36x128xf32>
    %56 = tpu.matmul %53, %55, %cst_58 {dimension_numbers = #tpu.dot_dimension_numbers<[1], [0], [0], [1], [0, 0, 1, 1], [], []>} : vector<36x128xf32>, vector<128x128xf32>, vector<36x128xf32> -> vector<36x128xf32>
    %57 = arith.addf %51, %56 : vector<36x128xf32>
    %c2_59 = arith.constant 2 : index
    %c2_60 = arith.constant 2 : index
    %c0_61 = arith.constant 0 : index
    %58 = vector.load %arg9[%c2_59, %c2_60, %c0_61] : memref<8x8x128xf32, #tpu.memory_space<vmem>>, vector<6x6x128xf32>
    %59 = vector.shape_cast %58 : vector<6x6x128xf32> to vector<36x128xf32>
    %c8 = arith.constant 8 : index
    %c0_62 = arith.constant 0 : index
    %c0_63 = arith.constant 0 : index
    %60 = vector.load %arg4[%c8, %c0_62, %c0_63] : memref<9x128x128xf32, #tpu.memory_space<vmem>>, vector<1x128x128xf32>
    %61 = vector.shape_cast %60 : vector<1x128x128xf32> to vector<128x128xf32>
    %cst_64 = arith.constant dense<0.000000e+00> : vector<36x128xf32>
    %62 = tpu.matmul %59, %61, %cst_64 {dimension_numbers = #tpu.dot_dimension_numbers<[1], [0], [0], [1], [0, 0, 1, 1], [], []>} : vector<36x128xf32>, vector<128x128xf32>, vector<36x128xf32> -> vector<36x128xf32>
    %63 = arith.addf %57, %62 : vector<36x128xf32>
    %c0_65 = arith.constant 0 : index
    %c0_66 = arith.constant 0 : index
    %64 = vector.load %arg5[%c0_65, %c0_66] : memref<1x128xf32, #tpu.memory_space<vmem>>, vector<1x128xf32>
    %65 = vector.broadcast %64 : vector<1x128xf32> to vector<36x128xf32>
    %66 = arith.addf %63, %65 : vector<36x128xf32>
    %cst_67 = arith.constant 0.000000e+00 : f32
    %67 = vector.broadcast %cst_67 : f32 to vector<36x128xf32>
    %68 = arith.maximumf %66, %67 : vector<36x128xf32>
    %cst_68 = arith.constant 0.000000e+00 : f32
    %69 = vector.broadcast %cst_68 : f32 to vector<6x1x128xf32>
    %c0_69 = arith.constant 0 : index
    %c0_70 = arith.constant 0 : index
    %c0_71 = arith.constant 0 : index
    %70 = vector.load %arg10[%c0_69, %c0_70, %c0_71] : memref<6x8x128xf32, #tpu.memory_space<vmem>>, vector<6x1x128xf32>
    tpu.vector_store %arg10[%c0_69, %c0_70, %c0_71], %69 {strides = array<i32>} : memref<6x8x128xf32, #tpu.memory_space<vmem>>, vector<6x1x128xf32>,
    %cst_72 = arith.constant 0.000000e+00 : f32
    %71 = vector.broadcast %cst_72 : f32 to vector<6x1x128xf32>
    %c0_73 = arith.constant 0 : index
    %c7_74 = arith.constant 7 : index
    %c0_75 = arith.constant 0 : index
    %72 = vector.load %arg10[%c0_73, %c7_74, %c0_75] : memref<6x8x128xf32, #tpu.memory_space<vmem>>, vector<6x1x128xf32>
    tpu.vector_store %arg10[%c0_73, %c7_74, %c0_75], %71 {strides = array<i32>} : memref<6x8x128xf32, #tpu.memory_space<vmem>>, vector<6x1x128xf32>,
    %73 = vector.shape_cast %68 : vector<36x128xf32> to vector<6x6x128xf32>
    %c0_76 = arith.constant 0 : index
    %c1_77 = arith.constant 1 : index
    %c0_78 = arith.constant 0 : index
    %74 = vector.load %arg10[%c0_76, %c1_77, %c0_78] : memref<6x8x128xf32, #tpu.memory_space<vmem>>, vector<6x6x128xf32>
    tpu.vector_store %arg10[%c0_76, %c1_77, %c0_78], %73 {strides = array<i32>} : memref<6x8x128xf32, #tpu.memory_space<vmem>>, vector<6x6x128xf32>,
    %c0_79 = arith.constant 0 : index
    %c0_80 = arith.constant 0 : index
    %c0_81 = arith.constant 0 : index
    %75 = vector.load %arg10[%c0_79, %c0_80, %c0_81] : memref<6x8x128xf32, #tpu.memory_space<vmem>>, vector<6x8x128xf32>
    %76 = vector.shape_cast %75 : vector<6x8x128xf32> to vector<48x128xf32>
    %c0_82 = arith.constant 0 : index
    %c0_83 = arith.constant 0 : index
    %77 = vector.load %arg6[%c0_82, %c0_83] : memref<128x128xf32, #tpu.memory_space<vmem>>, vector<128x128xf32>
    %cst_84 = arith.constant dense<0.000000e+00> : vector<48x128xf32>
    %78 = tpu.matmul %76, %77, %cst_84 {dimension_numbers = #tpu.dot_dimension_numbers<[1], [0], [0], [1], [0, 0, 1, 1], [], []>} : vector<48x128xf32>, vector<128x128xf32>, vector<48x128xf32> -> vector<48x128xf32>
    %cst_85 = arith.constant 0.000000e+00 : f32
    %79 = vector.broadcast %cst_85 : f32 to vector<1x8x128xf32>
    %80 = vector.shape_cast %78 : vector<48x128xf32> to vector<6x8x128xf32>
    %81 = tpu.concatenate %79, %80, %79 in 0 : vector<1x8x128xf32>, vector<6x8x128xf32>, vector<1x8x128xf32> -> vector<8x8x128xf32>
    %c0_86 = arith.constant 0 : index
    %c0_87 = arith.constant 0 : index
    %82 = vector.load %arg7[%c0_86, %c0_87] : memref<1x128xf32, #tpu.memory_space<vmem>>, vector<1x128xf32>
    %83 = vector.broadcast %82 : vector<1x128xf32> to vector<64x128xf32>
    %84 = arith.addf %1, %83 : vector<64x128xf32>
    %85 = vector.shape_cast %84 : vector<64x128xf32> to vector<8x8x128xf32>
    %86 = arith.addf %85, %81 : vector<8x8x128xf32>
    %cst_88 = arith.constant 0.000000e+00 : f32
    %87 = vector.broadcast %cst_88 : f32 to vector<8x8x128xf32>
    %88 = arith.maximumf %86, %87 : vector<8x8x128xf32>
    %c0_89 = arith.constant 0 : index
    %c0_90 = arith.constant 0 : index
    %c0_91 = arith.constant 0 : index
    %c0_92 = arith.constant 0 : index
    %89 = vector.load %arg8[%c0_89, %c0_90, %c0_91, %c0_92] : memref<1x8x8x128xf32, #tpu.memory_space<vmem>>, vector<1x8x8x128xf32>
    %90 = vector.shape_cast %89 : vector<1x8x8x128xf32> to vector<8x8x128xf32>
    %91 = vector.shape_cast %88 : vector<8x8x128xf32> to vector<1x8x8x128xf32>
    tpu.vector_store %arg8[%c0_89, %c0_90, %c0_91, %c0_92], %91 {strides = array<i32>} : memref<1x8x8x128xf32, #tpu.memory_space<vmem>>, vector<1x8x8x128xf32>,
    return
  }
  func.func @transform_0(%arg0: i32) -> (i32, i32, i32) {
    %c0_i32 = arith.constant 0 : i32
    %c0_i32_0 = arith.constant 0 : i32
    %c0_i32_1 = arith.constant 0 : i32
    return %arg0, %c0_i32, %c0_i32_0 : i32, i32, i32
  }
  func.func @transform_1(%arg0: i32) -> (i32, i32) {
    %c0_i32 = arith.constant 0 : i32
    %c0_i32_0 = arith.constant 0 : i32
    %c0_i32_1 = arith.constant 0 : i32
    return %c0_i32, %c0_i32_0 : i32, i32
  }
  func.func @transform_2(%arg0: i32) -> (i32, i32) {
    %c0_i32 = arith.constant 0 : i32
    %c0_i32_0 = arith.constant 0 : i32
    %c0_i32_1 = arith.constant 0 : i32
    return %c0_i32, %c0_i32_0 : i32, i32
  }
  func.func @transform_3(%arg0: i32) -> (i32, i32, i32) {
    %c0_i32 = arith.constant 0 : i32
    %c0_i32_0 = arith.constant 0 : i32
    %c0_i32_1 = arith.constant 0 : i32
    %c0_i32_2 = arith.constant 0 : i32
    return %c0_i32, %c0_i32_0, %c0_i32_1 : i32, i32, i32
  }
  func.func @transform_4(%arg0: i32) -> (i32, i32) {
    %c0_i32 = arith.constant 0 : i32
    %c0_i32_0 = arith.constant 0 : i32
    %c0_i32_1 = arith.constant 0 : i32
    return %c0_i32, %c0_i32_0 : i32, i32
  }
  func.func @transform_5(%arg0: i32) -> (i32, i32) {
    %c0_i32 = arith.constant 0 : i32
    %c0_i32_0 = arith.constant 0 : i32
    %c0_i32_1 = arith.constant 0 : i32
    return %c0_i32, %c0_i32_0 : i32, i32
  }
  func.func @transform_6(%arg0: i32) -> (i32, i32) {
    %c0_i32 = arith.constant 0 : i32
    %c0_i32_0 = arith.constant 0 : i32
    %c0_i32_1 = arith.constant 0 : i32
    return %c0_i32, %c0_i32_0 : i32, i32
  }
  func.func @transform_7(%arg0: i32) -> (i32, i32, i32, i32) {
    %c0_i32 = arith.constant 0 : i32
    %c0_i32_0 = arith.constant 0 : i32
    %c0_i32_1 = arith.constant 0 : i32
    %c0_i32_2 = arith.constant 0 : i32
    return %arg0, %c0_i32, %c0_i32_0, %c0_i32_1 : i32, i32, i32, i32
  }
}

</mosaic_0001>

<bundles_post_ra>
// kernel: bottleneck_d_forward.1
= control target key start
LH: loop header
LB: loop body
LE: loop exit
PB: predicated region body
PF: predicated region fallthrough
CT: control target
= control target key end

     0   :  { %s1830_s24 = smov 0   ;;  %s2590_s0 = inlined_call_operand.vmem [shape: f32[2,64,128], index: 0, kind: input, shape index: {}]   ;;  %s2591_s1 = inlined_call_operand.vmem [shape: f32[128,128], index: 1, kind: input, shape index: {}]   ;;  %s2592_s2 = inlined_call_operand.vmem [shape: f32[1,128], index: 2, kind: input, shape index: {}]   ;;  %s2593_s3 = inlined_call_operand.vmem [shape: f32[9,128,128], index: 3, kind: input, shape index: {}]   ;;  %s2594_s4 = inlined_call_operand.vmem [shape: f32[1,128], index: 4, kind: input, shape index: {}]   ;;  %s2595_s5 = inlined_call_operand.vmem [shape: f32[128,128], index: 5, kind: input, shape index: {}]   ;;  %s2596_s6 = inlined_call_operand.vmem [shape: f32[1,128], index: 6, kind: input, shape index: {}]   ;;  %s2597_s7 = inlined_call_operand.vmem [shape: f32[2,8,8,128], index: 7, kind: output, shape index: {}]  }
   0x1 LB: > { %s1605_s25 = sadd.s32 4294967295, %s1787_s24   ;;  %p1609_p0 = scmp.ge.s32.totalorder %s1787_s24, 1  ;;  %s1787_s24 = sphi %s1830_s24, %s17_s24  }
   0x2   : > { %p237_p1 = scmp.lt.s32.totalorder %s1787_s24, 3 }
   0x4   : > { %p238_p2 = pnand %p1609_p0, %p237_p1 }
   0x5   : > { %p269_p3 = scmp.lt.s32.totalorder (!%p238_p2), %s1605_s25, 1 }
   0x6   : > { %241 = sbr.rel (%p238_p2) target bundleno = 793 (0x319), region = 48 }
   0xb   : > { %v302_v0 = vld [vmem:[%s2591_s1 + $0x78] sm:$0xff]  ;;  %v301_v1 = vld [vmem:[%s2591_s1 + $0x70] sm:$0xff]  ;;  %v300_v2 = vld [vmem:[%s2591_s1 + $0x68] sm:$0xff]  ;;  %s2599_s25 = smov (!%p269_p3, %s1605_s25), 1 }
   0xc   : > { %307 = vmatpush.msra.mxu0 %v302_v0  ;;  %v299_v3 = vld [vmem:[%s2591_s1 + $0x60] sm:$0xff]  ;;  %s1744_s11 = sshll.u32 %s2599_s25, 6  ;;  %v298_v5 = vld [vmem:[%s2591_s1 + $0x58] sm:$0xff]  ;;  %v297_v8 = vld [vmem:[%s2591_s1 + $0x50] sm:$0xff] }
   0xd   : > { %s1853_s14 = scalar_lea.vmem %s2590_s0, %s1744_s11  ;;  %v1858_v4 = vld [vmem:[%s2596_s6] ss:$0 sm:$0xff]  ;;  %v296_v10 = vld [vmem:[%s2591_s1 + $0x48] sm:$0xff]  ;;  %s1874_s26 = scalar_lea.vmem %s2597_s7, %s1744_s11  ;;  %v294_v12 = vld [vmem:[%s2591_s1 + $0x38] sm:$0xff] }
   0xe   : > { %308 = vmatpush.msra.mxu0 %v301_v1  ;;  %v279_v6 = vld [vmem:[%s1853_s14] sm:$0xff]  ;;  %v293_v13 = vld [vmem:[%s2591_s1 + $0x30] sm:$0xff]  ;;  %v292_v14 = vld [vmem:[%s2591_s1 + $0x28] sm:$0xff] }
   0xf   : > { %v1518_v7 = vadd.f32 %v1858_v4, %v279_v6  ;;  %v295_v11 = vld [vmem:[%s2591_s1 + $0x40] sm:$0xff]  ;;  %v290_v16 = vld [vmem:[%s2591_s1 + $0x18] sm:$0xff]  ;;  %v289_v17 = vld [vmem:[%s2591_s1 + $0x10] sm:$0xff] }
  0x10   : > { %309 = vmatpush.msra.mxu0 %v300_v2  ;;  %v291_v15 = vld [vmem:[%s2591_s1 + $0x20] sm:$0xff]  ;;  %v288_v18 = vld [vmem:[%s2591_s1 + $0x8] sm:$0xff]  ;;  %v281_v21 = vld [vmem:[%s1853_s14 + $0x10] sm:$0xff] }
  0x11   : > { %v1534_v9 = vmax.f32 %v1518_v7, 0.0  ;;  %v287_v19 = vld [vmem:[%s2591_s1] sm:$0xff]  ;;  %v280_v20 = vld [vmem:[%s1853_s14 + $0x8] sm:$0xff]  ;;  %v1629_v22 = vld [vmem:[%s2593_s3 + $0xf8] sm:$0xff] }
  0x12   : > { %310 = vmatpush.msra.mxu0 %v299_v3  ;;  %480 = vmatpush.msra.mxu1 %v1629_v22  ;;  %v282_v23 = vld [vmem:[%s1853_s14 + $0x18] sm:$0xff]  ;;  %v283_v24 = vld [vmem:[%s1853_s14 + $0x20] sm:$0xff]  ;;  %v284_v25 = vld [vmem:[%s1853_s14 + $0x28] sm:$0xff] }
  0x13   : > { %1542 = vst [vmem:[%s1874_s26] sm:$0xff] %v1534_v9  ;;  %v285_v26 = vld [vmem:[%s1853_s14 + $0x30] sm:$0xff]  ;;  %v1627_v28 = vld [vmem:[%s2593_s3 + $0xe8] sm:$0xff]  ;;  %v1626_v29 = vld [vmem:[%s2593_s3 + $0xe0] sm:$0xff] }
  0x14   : > { %311 = vmatpush.msra.mxu0 %v298_v5  ;;  %v1628_v27 = vld [vmem:[%s2593_s3 + $0xf0] sm:$0xff]  ;;  %v1625_v30 = vld [vmem:[%s2593_s3 + $0xd8] sm:$0xff]  ;;  %v1623_v32 = vld [vmem:[%s2593_s3 + $0xc8] sm:$0xff] }
  0x15   : > { %481 = vmatpush.msra.mxu1 %v1628_v27  ;;  %v1624_v31 = vld [vmem:[%s2593_s3 + $0xd0] sm:$0xff]  ;;  %v286_v33 = vld [vmem:[%s1853_s14 + $0x38] sm:$0xff]  ;;  %v1622_v34 = vld [vmem:[%s2593_s3 + $0xc0] sm:$0xff] }
  0x16   : > { %312 = vmatpush.msra.mxu0 %v297_v8  ;;  %v1621_v35 = vld [vmem:[%s2593_s3 + $0xb8] sm:$0xff]  ;;  %v1620_v36 = vld [vmem:[%s2593_s3 + $0xb0] sm:$0xff]  ;;  %v1619_v37 = vld [vmem:[%s2593_s3 + $0xa8] sm:$0xff]  ;;  %v1525_v39 = vadd.f32 %v1858_v4, %v286_v33 }
  0x17   : > { %482 = vmatpush.msra.mxu1 %v1627_v28  ;;  %v1947_v38 = vld [vmem:[%s2592_s2] ss:$0 sm:$0xff]  ;;  %v1617_v43 = vld [vmem:[%s2593_s3 + $0x98] sm:$0xff]  ;;  %v1616_v45 = vld [vmem:[%s2593_s3 + $0x90] sm:$0xff] }
  0x18   : > { %313 = vmatpush.msra.mxu0 %v296_v10  ;;  %v1618_v40 = vld [vmem:[%s2593_s3 + $0xa0] sm:$0xff]  ;;  %v1541_v41 = vmax.f32 %v1525_v39, 0.0  ;;  %v1615_v47 = vld [vmem:[%s2593_s3 + $0x88] sm:$0xff] }
  0x19   : > { %483 = vmatpush.msra.mxu1 %v1626_v29  ;;  %v1614_v48 = vld [vmem:[%s2593_s3 + $0x80] sm:$0xff] }
  0x1a   : > { %314 = vmatpush.msra.mxu0 %v295_v11  ;;  %1549 = vst [vmem:[%s1874_s26 + $0x38] sm:$0xff] %v1541_v41  ;;  %v396_v29 = vld [vmem:[%s2593_s3 + $0x40] sm:$0xff]  ;;  %v393_v41 = vld [vmem:[%s2593_s3 + $0x28] sm:$0xff] }
  0x1b   : > { %484 = vmatpush.msra.mxu1 %v1625_v30  ;;  %v395_v30 = vld [vmem:[%s2593_s3 + $0x38] sm:$0xff] }
  0x1c   : > { %315 = vmatpush.msra.mxu0 %v294_v12 }
  0x1d   : > { %485 = vmatpush.msra.mxu1 %v1624_v31 }
  0x1e   : > { %316 = vmatpush.msra.mxu0 %v293_v13  ;;  %v403_v13 = vld [vmem:[%s2593_s3 + $0x78] sm:$0xff] }
  0x1f   : > { %486 = vmatpush.msra.mxu1 %v1623_v32  ;;  %547 = vmatpush.msra.mxu2 %v403_v13 }
  0x20   : > { %317 = vmatpush.msra.mxu0 %v292_v14 }
  0x21   : > { %487 = vmatpush.msra.mxu1 %v1622_v34 }
  0x22   : > { %318 = vmatpush.msra.mxu0 %v291_v15  ;;  %v402_v15 = vld [vmem:[%s2593_s3 + $0x70] sm:$0xff] }
  0x23   : > { %488 = vmatpush.msra.mxu1 %v1621_v35  ;;  %548 = vmatpush.msra.mxu2 %v402_v15  ;;  %v394_v35 = vld [vmem:[%s2593_s3 + $0x30] sm:$0xff] }
  0x24   : > { %319 = vmatpush.msra.mxu0 %v290_v16  ;;  %v401_v16 = vld [vmem:[%s2593_s3 + $0x68] sm:$0xff] }
  0x25   : > { %489 = vmatpush.msra.mxu1 %v1620_v36  ;;  %549 = vmatpush.msra.mxu2 %v401_v16  ;;  %v1645_v36 = vld [vmem:[%s2593_s3 + $0x178] sm:$0xff] }
  0x26   : > { %320 = vmatpush.msra.mxu0 %v289_v17  ;;  %655 = vmatpush.msra.mxu3 %v1645_v36 }
  0x27   : > { %490 = vmatpush.msra.mxu1 %v1619_v37  ;;  %v1644_v37 = vld [vmem:[%s2593_s3 + $0x170] sm:$0xff] }
  0x28   : > { %321 = vmatpush.msra.mxu0 %v288_v18  ;;  %v400_v18 = vld [vmem:[%s2593_s3 + $0x60] sm:$0xff]  ;;  %656 = vmatpush.msra.mxu3 %v1644_v37  ;;  %v1633_v37 = vld [vmem:[%s2593_s3 + $0x118] sm:$0xff] }
  0x29   : > { %491 = vmatpush.msra.mxu1 %v1618_v40  ;;  %550 = vmatpush.msra.mxu2 %v400_v18 }
  0x2a   : > { %322 = vmatpush.msra.mxu0 %v287_v19  ;;  %v399_v19 = vld [vmem:[%s2593_s3 + $0x58] sm:$0xff] }
  0x2b   : > { %323 = vmatmul.f32.vlgmr.msra.gmra.mxu0 %v279_v6  ;;  %492 = vmatpush.msra.mxu1 %v1617_v43  ;;  %v1643_v43 = vld [vmem:[%s2593_s3 + $0x168] sm:$0xff] }
  0x2c   : > { %551 = vmatpush.msra.mxu2 %v399_v19  ;;  %657 = vmatpush.msra.mxu3 %v1643_v43 }
  0x2d   : > { %493 = vmatpush.msra.mxu1 %v1616_v45  ;;  %v392_v45 = vld [vmem:[%s2593_s3 + $0x20] sm:$0xff] }
  0x2f   : > { %494 = vmatpush.msra.mxu1 %v1615_v47 }
  0x31   : > { %495 = vmatpush.msra.mxu1 %v1614_v48  ;;  %v391_v48 = vld [vmem:[%s2593_s3 + $0x18] sm:$0xff] }
  0x33   : > { %326 = vmatmul.f32.gmra.mxu0 %v280_v20 }
  0x3b   : > { %329 = vmatmul.f32.gmra.mxu0 %v281_v21 }
  0x43   : > { %332 = vmatmul.f32.gmra.mxu0 %v282_v23  ;;  %v398_v23 = vld [vmem:[%s2593_s3 + $0x50] sm:$0xff] }
  0x44   : > { %552 = vmatpush.msra.mxu2 %v398_v23 }
  0x4b   : > { %335 = vmatmul.f32.gmra.mxu0 %v283_v24  ;;  %v397_v24 = vld [vmem:[%s2593_s3 + $0x48] sm:$0xff] }
  0x4c   : > { %553 = vmatpush.msra.mxu2 %v397_v24 }
  0x4e   : > { %554 = vmatpush.msra.mxu2 %v396_v29 }
  0x50   : > { %555 = vmatpush.msra.mxu2 %v395_v30 }
  0x52   : > { %556 = vmatpush.msra.mxu2 %v394_v35 }
  0x53   : > { %338 = vmatmul.f32.gmra.mxu0 %v284_v25 }
  0x54   : > { %557 = vmatpush.msra.mxu2 %v393_v41  ;;  %v1632_v41 = vld [vmem:[%s2593_s3 + $0x110] sm:$0xff] }
  0x56   : > { %558 = vmatpush.msra.mxu2 %v392_v45  ;;  %v1659_v45 = vld [vmem:[%s2593_s3 + $0x1e8] sm:$0xff] }
  0x58   : > { %559 = vmatpush.msra.mxu2 %v391_v48  ;;  %v1630_v48 = vld [vmem:[%s2593_s3 + $0x100] sm:$0xff] }
  0x5b   : > { %341 = vmatmul.f32.gmra.mxu0 %v285_v26 }
  0x63   : > { %344 = vmatmul.f32.gmra.mxu0 %v286_v33 }
  0xa8   : > { %v324_v42 = vpop.f32.mrf.mxu0 }
  0xa9   : > { %v325_v44 = vadd.f32 %v1947_v38, %v324_v42 }
  0xab   : > { %v348_v46 = vmax.f32 %v325_v44, 0.0 }
  0xad   : > { %356 = vst [vmem:[#allocation2] sm:$0xff] %v348_v46  ;;  %v1642_v46 = vld [vmem:[%s2593_s3 + $0x160] sm:$0xff] }
  0xae   : > { %658 = vmatpush.msra.mxu3 %v1642_v46 }
  0xb0   : > { %v327_v49 = vpop.f32.mrf.mxu0 }
  0xb1   : > { %v328_v50 = vadd.f32 %v1947_v38, %v327_v49  ;;  %v1641_v49 = vld [vmem:[%s2593_s3 + $0x158] sm:$0xff] }
  0xb2   : > { %659 = vmatpush.msra.mxu3 %v1641_v49  ;;  %v1658_v49 = vld [vmem:[%s2593_s3 + $0x1e0] sm:$0xff] }
  0xb3   : > { %v349_v51 = vmax.f32 %v328_v50, 0.0  ;;  %v390_v50 = vld [vmem:[%s2593_s3 + $0x10] sm:$0xff] }
  0xb4   : > { %v404_v52 = vld [vmem:[#allocation2 + $0x1] sm:$0x3f]  ;;  %560 = vmatpush.msra.mxu2 %v390_v50 }
  0xb5   : > { %v416_v53 = vrot.slane %v404_v52, 2  ;;  %v417_v54 = vrot.slane %v404_v52, 4  ;;  %445 = vst [vmem:[#allocation1] ss:$4 sm:$0xff] %v404_v52  ;;  %v364_v31 = vld [vmem:[#allocation2] sm:$0x3f] }
  0xb6   : > { %357 = vst [vmem:[#allocation2 + $0x8] sm:$0xff] %v349_v51  ;;  %v376_v39 = vrot.slane %v364_v31, 2  ;;  %v377_v44 = vrot.slane %v364_v31, 4  ;;  %v1640_v51 = vld [vmem:[%s2593_s3 + $0x150] sm:$0xff]  ;;  %v389_v52 = vld [vmem:[%s2593_s3 + $0x8] sm:$0xff] }
  0xb7   : > { %447 = vst [vmem:[#allocation1 + $0x1] ss:$4 sm:$0xff] %v416_v53  ;;  %v1639_v53 = vld [vmem:[%s2593_s3 + $0x148] sm:$0xff]  ;;  %660 = vmatpush.msra.mxu3 %v1640_v51  ;;  %561 = vmatpush.msra.mxu2 %v389_v52  ;;  %v1657_v51 = vld [vmem:[%s2593_s3 + $0x1d8] sm:$0xff] }
  0xb8   : > { %449 = vst [vmem:[#allocation1 + $0x2] ss:$4 sm:$0xff] %v417_v54  ;;  %v330_v55 = vpop.f32.mrf.mxu0 }
  0xb9   : > { %v331_v56 = vadd.f32 %v1947_v38, %v330_v55  ;;  %v388_v55 = vld [vmem:[%s2593_s3] sm:$0xff]  ;;  %661 = vmatpush.msra.mxu3 %v1639_v53  ;;  %v1656_v53 = vld [vmem:[%s2593_s3 + $0x1d0] sm:$0xff] }
  0xba   : > { %562 = vmatpush.msra.mxu2 %v388_v55 }
  0xbb   : > { %v350_v60 = vmax.f32 %v331_v56, 0.0 }
  0xbd   : > { %v405_v57 = vld [vmem:[#allocation2 + $0x9] sm:$0x3f]  ;;  %358 = vst [vmem:[#allocation2 + $0x10] sm:$0xff] %v350_v60 }
  0xbe   : > { %v418_v58 = vrot.slane %v405_v57, 2  ;;  %v419_v59 = vrot.slane %v405_v57, 4  ;;  %451 = vst [vmem:[#allocation1 + $0x3] ss:$4 sm:$0xff] %v405_v57  ;;  %v365_v28 = vld [vmem:[#allocation2 + $0x8] sm:$0x3f] }
  0xbf   : > { %v378_v32 = vrot.slane %v365_v28, 2  ;;  %v379_v33 = vrot.slane %v365_v28, 4  ;;  %v1638_v57 = vld [vmem:[%s2593_s3 + $0x140] sm:$0xff]  ;;  %v693_v52 = vld [vmem:[#allocation2 + $0x8] sm:$0x3f] }
  0xc0   : > { %453 = vst [vmem:[#allocation1 + $0x20] ss:$4 sm:$0xff] %v418_v58  ;;  %v333_v61 = vpop.f32.mrf.mxu0  ;;  %662 = vmatpush.msra.mxu3 %v1638_v57  ;;  %v1655_v57 = vld [vmem:[%s2593_s3 + $0x1c8] sm:$0xff] }
  0xc1   : > { %455 = vst [vmem:[#allocation1 + $0x21] ss:$4 sm:$0xff] %v419_v59  ;;  %v334_v62 = vadd.f32 %v1947_v38, %v333_v61  ;;  %v1637_v61 = vld [vmem:[%s2593_s3 + $0x138] sm:$0xff] }
  0xc2   : > { %663 = vmatpush.msra.mxu3 %v1637_v61  ;;  %v706_v61 = vrot.slane %v693_v52, 4 }
  0xc3   : > { %v351_v63 = vmax.f32 %v334_v62, 0.0 }
  0xc4   : > { %v406_v2 = vld [vmem:[#allocation2 + $0x11] sm:$0x3f] }
  0xc5   : > { %v460_v0 = vld.sshfl [vmem:[#allocation1] sm:$0xff pattern:$0x73625140]  ;;  %359 = vst [vmem:[#allocation2 + $0x18] sm:$0xff] %v351_v63  ;;  %v420_v3 = vrot.slane %v406_v2, 2  ;;  %v421_v4 = vrot.slane %v406_v2, 4 }
  0xc6   : > { %496 = vmatmul.f32.vlgmr.msra.gmra.mxu1 %v460_v0  ;;  %457 = vst [vmem:[#allocation1 + $0x22] ss:$4 sm:$0xff] %v406_v2  ;;  %v366_v40 = vld [vmem:[#allocation2 + $0x10] sm:$0x3f]  ;;  %v1636_v0 = vld [vmem:[%s2593_s3 + $0x130] sm:$0xff] }
  0xc7   : > { %459 = vst [vmem:[#allocation1 + $0x23] ss:$4 sm:$0xff] %v420_v3  ;;  %v380_v47 = vrot.slane %v366_v40, 2  ;;  %v381_v56 = vrot.slane %v366_v40, 4  ;;  %v1635_v3 = vld [vmem:[%s2593_s3 + $0x128] sm:$0xff]  ;;  %664 = vmatpush.msra.mxu3 %v1636_v0  ;;  %v1652_v0 = vld [vmem:[%s2593_s3 + $0x1b0] sm:$0xff] }
  0xc8   : > { %v336_v1 = vpop.f32.mrf.mxu0  ;;  %462 = vst [vmem:[#allocation1] ss:$4 sm:$0xff] %v421_v4 }
  0xc9   : > { %v337_v6 = vadd.f32 %v1947_v38, %v336_v1  ;;  %665 = vmatpush.msra.mxu3 %v1635_v3 }
  0xcb   : > { %v352_v11 = vmax.f32 %v337_v6, 0.0  ;;  %v1634_v6 = vld [vmem:[%s2593_s3 + $0x120] sm:$0xff] }
  0xcc   : > { %v407_v5 = vld [vmem:[#allocation2 + $0x19] sm:$0x3f]  ;;  %666 = vmatpush.msra.mxu3 %v1634_v6  ;;  %v1649_v6 = vld [vmem:[%s2593_s3 + $0x198] sm:$0xff] }
  0xcd   : > { %v422_v7 = vrot.slane %v407_v5, 2  ;;  %v423_v8 = vrot.slane %v407_v5, 4  ;;  %463 = vst [vmem:[#allocation1 + $0x1] ss:$4 sm:$0xff] %v407_v5  ;;  %v367_v54 = vld [vmem:[#allocation2 + $0x18] sm:$0x3f] }
  0xce   : > { %v461_v10 = vld.sshfl [vmem:[#allocation1 + $0x20] sm:$0xff pattern:$0x73625140]  ;;  %360 = vst [vmem:[#allocation2 + $0x20] sm:$0xff] %v352_v11  ;;  %v382_v59 = vrot.slane %v367_v54, 2  ;;  %v383_v62 = vrot.slane %v367_v54, 4  ;;  %667 = vmatpush.msra.mxu3 %v1633_v37 }
  0xcf   : > { %464 = vst [vmem:[#allocation1 + $0x2] ss:$4 sm:$0xff] %v422_v7  ;;  %499 = vmatmul.f32.gmra.mxu1 %v461_v10  ;;  %v1667_v37 = vld [vmem:[%s2593_s3 + $0x228] sm:$0xff] }
  0xd0   : > { %v339_v9 = vpop.f32.mrf.mxu0  ;;  %465 = vst [vmem:[#allocation1 + $0x3] ss:$4 sm:$0xff] %v423_v8  ;;  %668 = vmatpush.msra.mxu3 %v1632_v41 }
  0xd1   : > { %v340_v12 = vadd.f32 %v1947_v38, %v339_v9  ;;  %v580_v9 = vld [vmem:[#allocation2 + $0xa] sm:$0x3f] }
  0xd2   : > { %v593_v13 = vrot.slane %v580_v9, 2  ;;  %v594_v15 = vrot.slane %v580_v9, 4 }
  0xd3   : > { %v353_v14 = vmax.f32 %v340_v12, 0.0 }
  0xd5   : > { %361 = vst [vmem:[#allocation2 + $0x28] sm:$0xff] %v353_v14  ;;  %v408_v20 = vld [vmem:[#allocation2 + $0x21] sm:$0x3f]  ;;  %v581_v14 = vld [vmem:[#allocation2 + $0x12] sm:$0x3f] }
  0xd6   : > { %v424_v21 = vrot.slane %v408_v20, 2  ;;  %v425_v22 = vrot.slane %v408_v20, 4  ;;  %466 = vst [vmem:[#allocation1 + $0x20] ss:$4 sm:$0xff] %v408_v20  ;;  %v368_v60 = vld [vmem:[#allocation2 + $0x20] sm:$0x3f] }
  0xd7   : > { %v470_v17 = vld.sshfl [vmem:[#allocation1] sm:$0xff pattern:$0x73625140]  ;;  %v384_v1 = vrot.slane %v368_v60, 2  ;;  %v385_v2 = vrot.slane %v368_v60, 4  ;;  %v595_v18 = vrot.slane %v581_v14, 2 }
  0xd8   : > { %502 = vmatmul.f32.gmra.mxu1 %v470_v17  ;;  %467 = vst [vmem:[#allocation1 + $0x21] ss:$4 sm:$0xff] %v424_v21  ;;  %v342_v4 = vpop.f32.mrf.mxu0  ;;  %v579_v17 = vld [vmem:[#allocation2 + $0x2] sm:$0x3f] }
  0xd9   : > { %468 = vst [vmem:[#allocation1 + $0x22] ss:$4 sm:$0xff] %v425_v22  ;;  %v343_v7 = vadd.f32 %v1947_v38, %v342_v4  ;;  %v591_v19 = vrot.slane %v579_v17, 2  ;;  %v592_v21 = vrot.slane %v579_v17, 4  ;;  %v583_v22 = vld [vmem:[#allocation2 + $0x22] sm:$0x3f] }
  0xda   : > { %v599_v23 = vrot.slane %v583_v22, 2  ;;  %v696_v3 = vld [vmem:[#allocation2 + $0x20] sm:$0x3f]  ;;  %v2118_v4 = vld [vmem:[#allocation2 + $0x11] sm:$0x3f] }
  0xdb   : > { %v354_v8 = vmax.f32 %v343_v7, 0.0  ;;  %v1677_v7 = vld [vmem:[%s2593_s3 + $0x278] sm:$0xff] }
  0xdc   : > { %v409_v25 = vld [vmem:[#allocation2 + $0x29] sm:$0x3f]  ;;  %882 = vmatpush.msrb.mxu2 %v1677_v7 }
  0xdd   : > { %v426_v26 = vrot.slane %v409_v25, 2  ;;  %v427_v27 = vrot.slane %v409_v25, 4  ;;  %469 = vst [vmem:[#allocation1 + $0x23] ss:$4 sm:$0xff] %v409_v25  ;;  %v369_v5 = vld [vmem:[#allocation2 + $0x28] sm:$0x3f] }
  0xde   : > { %v386_v10 = vrot.slane %v369_v5, 2  ;;  %v387_v11 = vrot.slane %v369_v5, 4  ;;  %362 = vst [vmem:[#allocation2 + $0x30] sm:$0xff] %v354_v8  ;;  %v600_v25 = vrot.slane %v583_v22, 4  ;;  %v697_v50 = vld [vmem:[#allocation2 + $0x28] sm:$0x3f] }
  0xdf   : > { %472 = vst [vmem:[#allocation1] ss:$4 sm:$0xff] %v426_v26  ;;  %v582_v26 = vld [vmem:[#allocation2 + $0x1a] sm:$0x3f] }
  0xe0   : > { %473 = vst [vmem:[#allocation1 + $0x1] ss:$4 sm:$0xff] %v427_v27  ;;  %v584_v27 = vld [vmem:[#allocation2 + $0x2a] sm:$0x3f]  ;;  %v597_v30 = vrot.slane %v582_v26, 2 }
  0xe1   : > { %v601_v43 = vrot.slane %v584_v27, 2  ;;  %v602_v46 = vrot.slane %v584_v27, 4 }
  0xe4   : > { %v471_v34 = vld.sshfl [vmem:[#allocation1 + $0x20] sm:$0xff pattern:$0x73625140] }
  0xe5   : > { %520 = vst [vmem:[#allocation1 + $0x20] ss:$4 sm:$0xff] %v378_v32  ;;  %505 = vmatmul.f32.gmra.mxu1 %v471_v34  ;;  %v598_v32 = vrot.slane %v582_v26, 4  ;;  %v2059_v34 = vld [vmem:[#allocation2 + $0x18] sm:$0x3f] }
  0xe6   : > { %522 = vst [vmem:[#allocation1 + $0x21] ss:$4 sm:$0xff] %v379_v33 }
  0xe7   : > { %v474_v42 = vld.sshfl [vmem:[#allocation1] sm:$0xff pattern:$0x73625140]  ;;  %524 = vst [vmem:[#allocation1 + $0x22] ss:$4 sm:$0xff] %v366_v40  ;;  %v709_v40 = vrot.slane %v2059_v34, 2 }
  0xe8   : > { %512 = vst [vmem:[#allocation1] ss:$4 sm:$0xff] %v364_v31  ;;  %v694_v31 = vld [vmem:[#allocation2 + $0x10] sm:$0x3f] }
  0xe9   : > { %514 = vst [vmem:[#allocation1 + $0x1] ss:$4 sm:$0xff] %v376_v39  ;;  %v707_v33 = vrot.slane %v694_v31, 2  ;;  %v708_v35 = vrot.slane %v694_v31, 4  ;;  %v1661_v39 = vld [vmem:[%s2593_s3 + $0x1f8] sm:$0xff] }
  0xea   : > { %516 = vst [vmem:[#allocation1 + $0x2] ss:$4 sm:$0xff] %v377_v44  ;;  %769 = vmatpush.msrb.mxu1 %v1661_v39  ;;  %v1631_v44 = vld [vmem:[%s2593_s3 + $0x108] sm:$0xff] }
  0xeb   : > { %518 = vst [vmem:[#allocation1 + $0x3] ss:$4 sm:$0xff] %v365_v28  ;;  %v596_v28 = vrot.slane %v581_v14, 4  ;;  %669 = vmatpush.msra.mxu3 %v1631_v44  ;;  %v345_v44 = vpop.f32.mrf.mxu0 }
  0xec   : > { %526 = vst [vmem:[#allocation1 + $0x23] ss:$4 sm:$0xff] %v380_v47 }
  0xed   : > { %508 = vmatmul.f32.gmra.mxu1 %v474_v42  ;;  %v1660_v42 = vld [vmem:[%s2593_s3 + $0x1f0] sm:$0xff]  ;;  %670 = vmatpush.msra.mxu3 %v1630_v48 }
  0xee   : > { %770 = vmatpush.msrb.mxu1 %v1660_v42  ;;  %v1666_v42 = vld [vmem:[%s2593_s3 + $0x220] sm:$0xff] }
  0xf0   : > { %771 = vmatpush.msrb.mxu1 %v1659_v45 }
  0xf2   : > { %v527_v58 = vld.sshfl [vmem:[#allocation1] sm:$0xff pattern:$0x73625140]  ;;  %772 = vmatpush.msrb.mxu1 %v1658_v49 }
  0xf3   : > { %529 = vst [vmem:[#allocation1] ss:$4 sm:$0xff] %v381_v56  ;;  %v528_v63 = vld.sshfl [vmem:[#allocation1 + $0x20] sm:$0xff pattern:$0x73625140]  ;;  %563 = vmatmul.f32.vlgmr.msra.gmra.mxu2 %v527_v58  ;;  %v714_v56 = vrot.slane %v697_v50, 4 }
  0xf4   : > { %530 = vst [vmem:[#allocation1 + $0x1] ss:$4 sm:$0xff] %v367_v54  ;;  %773 = vmatpush.msrb.mxu1 %v1657_v51  ;;  %v713_v54 = vrot.slane %v697_v50, 2  ;;  %v705_v58 = vrot.slane %v693_v52, 2 }
  0xf5   : > { %531 = vst [vmem:[#allocation1 + $0x2] ss:$4 sm:$0xff] %v382_v59 }
  0xf6   : > { %532 = vst [vmem:[#allocation1 + $0x3] ss:$4 sm:$0xff] %v383_v62  ;;  %774 = vmatpush.msrb.mxu1 %v1656_v53  ;;  %v698_v62 = vld [vmem:[#allocation2 + $0x30] sm:$0x3f] }
  0xf7   : > { %533 = vst [vmem:[#allocation1 + $0x20] ss:$4 sm:$0xff] %v368_v60  ;;  %v1654_v60 = vld [vmem:[%s2593_s3 + $0x1c0] sm:$0xff] }
  0xf8   : > { %534 = vst [vmem:[#allocation1 + $0x21] ss:$4 sm:$0xff] %v384_v1  ;;  %775 = vmatpush.msrb.mxu1 %v1655_v57  ;;  %v1651_v1 = vld [vmem:[%s2593_s3 + $0x1a8] sm:$0xff]  ;;  %v1664_v57 = vld [vmem:[%s2593_s3 + $0x210] sm:$0xff] }
  0xf9   : > { %535 = vst [vmem:[#allocation1 + $0x22] ss:$4 sm:$0xff] %v385_v2  ;;  %v1650_v2 = vld [vmem:[%s2593_s3 + $0x1a0] sm:$0xff] }
  0xfa   : > { %536 = vst [vmem:[#allocation1 + $0x23] ss:$4 sm:$0xff] %v369_v5  ;;  %776 = vmatpush.msrb.mxu1 %v1654_v60  ;;  %v710_v5 = vrot.slane %v2059_v34, 4  ;;  %v923_v60 = vld [vmem:[#allocation2 + $0x2a] sm:$0x3f] }
  0xfb   : > { %566 = vmatmul.f32.gmra.mxu2 %v528_v63  ;;  %v1653_v63 = vld [vmem:[%s2593_s3 + $0x1b8] sm:$0xff] }
  0xfc   : > { %777 = vmatpush.msrb.mxu1 %v1653_v63  ;;  %v1662_v63 = vld [vmem:[%s2593_s3 + $0x200] sm:$0xff] }
  0xfd   : > { %v537_v12 = vld.sshfl [vmem:[#allocation1] sm:$0xff pattern:$0x73625140] }
  0xfe   : > { %539 = vst [vmem:[#allocation1] ss:$4 sm:$0xff] %v386_v10  ;;  %778 = vmatpush.msrb.mxu1 %v1652_v0  ;;  %v1690_v0 = vld [vmem:[%s2593_s3 + $0x2e0] sm:$0xff] }
  0xff   : > { %540 = vst [vmem:[#allocation1 + $0x1] ss:$4 sm:$0xff] %v387_v11  ;;  %v820_v11 = vrot.slane %v2118_v4, 2 }
 0x100   : > { %779 = vmatpush.msrb.mxu1 %v1651_v1  ;;  %v939_v1 = vrot.slane %v923_v60, 2 }
 0x101   : > { %v538_v16 = vld.sshfl [vmem:[#allocation1 + $0x20] sm:$0xff pattern:$0x73625140] }
 0x102   : > { %628 = vst [vmem:[#allocation1 + $0x20] ss:$4 sm:$0xff] %v593_v13  ;;  %780 = vmatpush.msrb.mxu1 %v1650_v2  ;;  %v1648_v13 = vld [vmem:[%s2593_s3 + $0x190] sm:$0xff] }
 0x103   : > { %630 = vst [vmem:[#allocation1 + $0x21] ss:$4 sm:$0xff] %v594_v15  ;;  %569 = vmatmul.f32.gmra.mxu2 %v537_v12  ;;  %v712_v12 = vrot.slane %v696_v3, 4  ;;  %v2136_v15 = vld [vmem:[#allocation2 + $0x19] sm:$0x3f] }
 0x104   : > { %632 = vst [vmem:[#allocation1 + $0x22] ss:$4 sm:$0xff] %v581_v14  ;;  %781 = vmatpush.msrb.mxu1 %v1649_v6  ;;  %v1676_v14 = vld [vmem:[%s2593_s3 + $0x270] sm:$0xff]  ;;  %v823_v53 = vrot.slane %v2136_v15, 4 }
 0x105   : > { %634 = vst [vmem:[#allocation1 + $0x23] ss:$4 sm:$0xff] %v595_v18  ;;  %883 = vmatpush.msrb.mxu2 %v1676_v14  ;;  %v821_v18 = vrot.slane %v2118_v4, 4  ;;  %v1688_v6 = vld [vmem:[%s2593_s3 + $0x2d0] sm:$0xff] }
 0x106   : > { %v541_v20 = vld.sshfl [vmem:[#allocation1] sm:$0xff pattern:$0x73625140]  ;;  %782 = vmatpush.msrb.mxu1 %v1648_v13  ;;  %v1685_v13 = vld [vmem:[%s2593_s3 + $0x2b8] sm:$0xff]  ;;  %v919_v14 = vld [vmem:[#allocation2 + $0xa] sm:$0x3f] }
 0x107   : > { %620 = vst [vmem:[#allocation1] ss:$4 sm:$0xff] %v579_v17  ;;  %v1675_v17 = vld [vmem:[%s2593_s3 + $0x268] sm:$0xff] }
 0x108   : > { %622 = vst [vmem:[#allocation1 + $0x1] ss:$4 sm:$0xff] %v591_v19  ;;  %884 = vmatpush.msrb.mxu2 %v1675_v17  ;;  %v1646_v19 = vld [vmem:[%s2593_s3 + $0x180] sm:$0xff] }
 0x109   : > { %624 = vst [vmem:[#allocation1 + $0x2] ss:$4 sm:$0xff] %v592_v21  ;;  %v822_v21 = vrot.slane %v2136_v15, 2 }
 0x10a   : > { %626 = vst [vmem:[#allocation1 + $0x3] ss:$4 sm:$0xff] %v580_v9  ;;  %v711_v9 = vrot.slane %v696_v3, 2 }
 0x10b   : > { %572 = vmatmul.f32.gmra.mxu2 %v538_v16  ;;  %v1647_v16 = vld [vmem:[%s2593_s3 + $0x188] sm:$0xff] }
 0x10c   : > { %v2057_v24 = vld.sshfl [vmem:[#allocation1 + $0x20] sm:$0xff pattern:$0x73625140]  ;;  %783 = vmatpush.msrb.mxu1 %v1647_v16 }
 0x10d   : > { %641 = vst [vmem:[#allocation1 + $0x20] ss:$4 sm:$0xff] %v583_v22  ;;  %v1673_v22 = vld [vmem:[%s2593_s3 + $0x258] sm:$0xff] }
 0x10e   : > { %642 = vst [vmem:[#allocation1 + $0x21] ss:$4 sm:$0xff] %v599_v23  ;;  %784 = vmatpush.msrb.mxu1 %v1646_v19  ;;  %v715_v23 = vrot.slane %v698_v62, 2  ;;  %v2255_v19 = vld [vmem:[#allocation2 + $0x20] sm:$0x3f] }
 0x10f   : > { %643 = vst [vmem:[#allocation1 + $0x22] ss:$4 sm:$0xff] %v600_v25  ;;  %v1672_v25 = vld [vmem:[%s2593_s3 + $0x250] sm:$0xff] }
 0x110   : > { %644 = vst [vmem:[#allocation1 + $0x23] ss:$4 sm:$0xff] %v584_v27  ;;  %v1671_v27 = vld [vmem:[%s2593_s3 + $0x248] sm:$0xff] }
 0x111   : > { %v635_v29 = vld.sshfl [vmem:[#allocation1] sm:$0xff pattern:$0x73625140] }
 0x112   : > { %637 = vst [vmem:[#allocation1] ss:$4 sm:$0xff] %v596_v28  ;;  %671 = vmatmul.f32.vlgmr.msra.gmra.mxu3 %v635_v29  ;;  %v810_v28 = vld [vmem:[#allocation2 + $0x29] sm:$0x3f]  ;;  %v1670_v29 = vld [vmem:[%s2593_s3 + $0x240] sm:$0xff] }
 0x113   : > { %638 = vst [vmem:[#allocation1 + $0x1] ss:$4 sm:$0xff] %v582_v26  ;;  %575 = vmatmul.f32.gmra.mxu2 %v541_v20  ;;  %v1674_v20 = vld [vmem:[%s2593_s3 + $0x260] sm:$0xff] }
 0x114   : > { %639 = vst [vmem:[#allocation1 + $0x2] ss:$4 sm:$0xff] %v597_v30  ;;  %885 = vmatpush.msrb.mxu2 %v1674_v20  ;;  %v826_v30 = vrot.slane %v810_v28, 2  ;;  %v1683_v20 = vld [vmem:[%s2593_s3 + $0x2a8] sm:$0xff] }
 0x115   : > { %640 = vst [vmem:[#allocation1 + $0x3] ss:$4 sm:$0xff] %v598_v32  ;;  %v1669_v32 = vld [vmem:[%s2593_s3 + $0x238] sm:$0xff] }
 0x116   : > { %886 = vmatpush.msrb.mxu2 %v1673_v22 }
 0x117   : > { %v2061_v36 = vld.sshfl [vmem:[#allocation1 + $0x20] sm:$0xff pattern:$0x73625140] }
 0x118   : > { %742 = vst [vmem:[#allocation1 + $0x20] ss:$4 sm:$0xff] %v707_v33  ;;  %887 = vmatpush.msrb.mxu2 %v1672_v25  ;;  %v827_v33 = vrot.slane %v810_v28, 4  ;;  %v1049_v25 = vrot.slane %v2255_v19, 2 }
 0x119   : > { %744 = vst [vmem:[#allocation1 + $0x21] ss:$4 sm:$0xff] %v708_v35  ;;  %v806_v35 = vld [vmem:[#allocation2 + $0x9] sm:$0x3f] }
 0x11a   : > { %746 = vst [vmem:[#allocation1 + $0x22] ss:$4 sm:$0xff] %v2059_v34  ;;  %674 = vmatmul.f32.gmra.mxu3 %v2057_v24  ;;  %v716_v24 = vrot.slane %v698_v62, 4  ;;  %888 = vmatpush.msrb.mxu2 %v1671_v27  ;;  %v2171_v34 = vld [vmem:[#allocation2 + $0x31] sm:$0x3f]  ;;  %v818_v39 = vrot.slane %v806_v35, 2 }
 0x11b   : > { %748 = vst [vmem:[#allocation1 + $0x23] ss:$4 sm:$0xff] %v709_v40  ;;  %v819_v41 = vrot.slane %v806_v35, 4  ;;  %v828_v7 = vrot.slane %v2171_v34, 2  ;;  %v1709_v27 = vld [vmem:[%s2593_s3 + $0x378] sm:$0xff] }
 0x11c   : > { %v645_v47 = vld.sshfl [vmem:[#allocation1] sm:$0xff pattern:$0x73625140]  ;;  %889 = vmatpush.msrb.mxu2 %v1670_v29  ;;  %1109 = vmatpush.msrb.mxu0 %v1709_v27  ;;  %v1708_v29 = vld [vmem:[%s2593_s3 + $0x370] sm:$0xff] }
 0x11d   : > { %647 = vst [vmem:[#allocation1] ss:$4 sm:$0xff] %v601_v43  ;;  %v2185_v43 = vld [vmem:[#allocation2 + $0x12] sm:$0x3f]  ;;  %v1718_v27 = vld [vmem:[%s2593_s3 + $0x3c0] sm:$0xff] }
 0x11e   : > { %648 = vst [vmem:[#allocation1 + $0x1] ss:$4 sm:$0xff] %v602_v46  ;;  %890 = vmatpush.msrb.mxu2 %v1669_v32  ;;  %v933_v45 = vrot.slane %v2185_v43, 2  ;;  %v2189_v46 = vld [vmem:[#allocation2 + $0x1a] sm:$0x3f]  ;;  %v934_v48 = vrot.slane %v2185_v43, 4  ;;  %1110 = vmatpush.msrb.mxu0 %v1708_v29 }
 0x11f   : > { %v935_v51 = vrot.slane %v2189_v46, 2  ;;  %v922_v32 = vld [vmem:[#allocation2 + $0x22] sm:$0x3f]  ;;  %v1737_v29 = vld [vmem:[%s2593_s3 + $0x458] sm:$0xff] }
 0x122   : > { %v2095_v55 = vld.sshfl [vmem:[#allocation1 + $0x20] sm:$0xff pattern:$0x73625140]  ;;  %677 = vmatmul.f32.gmra.mxu3 %v645_v47  ;;  %v346_v47 = vadd.f32 %v1947_v38, %v345_v44  ;;  %v1693_v38 = vld [vmem:[%s2593_s3 + $0x2f8] sm:$0xff] }
 0x123   : > { %755 = vst [vmem:[#allocation1 + $0x20] ss:$4 sm:$0xff] %v697_v50  ;;  %995 = vmatpush.msrb.mxu3 %v1693_v38  ;;  %v1699_v38 = vld [vmem:[%s2593_s3 + $0x328] sm:$0xff] }
 0x124   : > { %756 = vst [vmem:[#allocation1 + $0x21] ss:$4 sm:$0xff] %v713_v54  ;;  %v355_v50 = vmax.f32 %v346_v47, 0.0  ;;  %v1665_v54 = vld [vmem:[%s2593_s3 + $0x218] sm:$0xff] }
 0x125   : > { %v2100_v59 = vld.sshfl [vmem:[#allocation1] sm:$0xff pattern:$0x73625140]  ;;  %757 = vst [vmem:[#allocation1 + $0x22] ss:$4 sm:$0xff] %v714_v56 }
 0x126   : > { %734 = vst [vmem:[#allocation1] ss:$4 sm:$0xff] %v693_v52  ;;  %v809_v52 = vld [vmem:[#allocation2 + $0x21] sm:$0x3f] }
 0x127   : > { %736 = vst [vmem:[#allocation1 + $0x1] ss:$4 sm:$0xff] %v705_v58  ;;  %v824_v56 = vrot.slane %v809_v52, 2  ;;  %v1692_v58 = vld [vmem:[%s2593_s3 + $0x2f0] sm:$0xff] }
 0x128   : > { %738 = vst [vmem:[#allocation1 + $0x2] ss:$4 sm:$0xff] %v706_v61  ;;  %996 = vmatpush.msrb.mxu3 %v1692_v58  ;;  %v1663_v61 = vld [vmem:[%s2593_s3 + $0x208] sm:$0xff] }
 0x129   : > { %740 = vst [vmem:[#allocation1 + $0x3] ss:$4 sm:$0xff] %v694_v31 }
 0x12a   : > { %758 = vst [vmem:[#allocation1 + $0x23] ss:$4 sm:$0xff] %v698_v62  ;;  %680 = vmatmul.f32.gmra.mxu3 %v2061_v36  ;;  %v1668_v36 = vld [vmem:[%s2593_s3 + $0x230] sm:$0xff]  ;;  %v1691_v62 = vld [vmem:[%s2593_s3 + $0x2e8] sm:$0xff] }
 0x12b   : > { %891 = vmatpush.msrb.mxu2 %v1668_v36  ;;  %363 = vst [vmem:[#allocation2 + $0x38] sm:$0xff] %v355_v50  ;;  %997 = vmatpush.msrb.mxu3 %v1691_v62  ;;  %v1033_v62 = vld [vmem:[#allocation2 + $0x10] sm:$0x3f] }
 0x12d   : > { %892 = vmatpush.msrb.mxu2 %v1667_v37  ;;  %998 = vmatpush.msrb.mxu3 %v1690_v0  ;;  %v1705_v37 = vld [vmem:[%s2593_s3 + $0x358] sm:$0xff]  ;;  %v1696_v0 = vld [vmem:[%s2593_s3 + $0x310] sm:$0xff] }
 0x12f   : > { %893 = vmatpush.msrb.mxu2 %v1666_v42 }
 0x130   : > { %v749_v8 = vld.sshfl [vmem:[#allocation1] sm:$0xff pattern:$0x73625140] }
 0x131   : > { %751 = vst [vmem:[#allocation1] ss:$4 sm:$0xff] %v710_v5  ;;  %v2127_v10 = vld.sshfl [vmem:[#allocation1 + $0x20] sm:$0xff pattern:$0x73625140]  ;;  %785 = vmatmul.f32.vlgmr.msrb.gmra.mxu1 %v749_v8  ;;  %894 = vmatpush.msrb.mxu2 %v1665_v54  ;;  %v829_v8 = vrot.slane %v2171_v34, 4 }
 0x132   : > { %752 = vst [vmem:[#allocation1 + $0x1] ss:$4 sm:$0xff] %v696_v3  ;;  %683 = vmatmul.f32.gmra.mxu3 %v2100_v59  ;;  %v825_v59 = vrot.slane %v809_v52, 4  ;;  %v940_v3 = vrot.slane %v923_v60, 4  ;;  %v2228_v5 = vld [vmem:[#allocation2 + $0x32] sm:$0x3f] }
 0x133   : > { %753 = vst [vmem:[#allocation1 + $0x2] ss:$4 sm:$0xff] %v711_v9  ;;  %895 = vmatpush.msrb.mxu2 %v1664_v57  ;;  %v2303_v47 = vld [vmem:[#allocation2 + $0x38] sm:$0x3f]  ;;  %v941_v50 = vrot.slane %v2228_v5, 2 }
 0x134   : > { %754 = vst [vmem:[#allocation1 + $0x3] ss:$4 sm:$0xff] %v712_v12  ;;  %v1686_v12 = vld [vmem:[%s2593_s3 + $0x2c0] sm:$0xff] }
 0x135   : > { %855 = vst [vmem:[#allocation1 + $0x20] ss:$4 sm:$0xff] %v820_v11  ;;  %896 = vmatpush.msrb.mxu2 %v1663_v61  ;;  %v2239_v11 = vld [vmem:[#allocation2 + $0x18] sm:$0x3f]  ;;  %v1725_v61 = vld [vmem:[%s2593_s3 + $0x3f8] sm:$0xff] }
 0x136   : > { %857 = vst [vmem:[#allocation1 + $0x21] ss:$4 sm:$0xff] %v821_v18  ;;  %v1048_v16 = vrot.slane %v2239_v11, 4  ;;  %v1684_v18 = vld [vmem:[%s2593_s3 + $0x2b0] sm:$0xff]  ;;  %v1698_v57 = vld [vmem:[%s2593_s3 + $0x320] sm:$0xff]  ;;  %1222 = vmatpush.msra.mxu1 %v1725_v61 }
 0x137   : > { %859 = vst [vmem:[#allocation1 + $0x22] ss:$4 sm:$0xff] %v2136_v15  ;;  %897 = vmatpush.msrb.mxu2 %v1662_v63  ;;  %v1047_v15 = vrot.slane %v2239_v11, 2 }
 0x138   : > { %861 = vst [vmem:[#allocation1 + $0x23] ss:$4 sm:$0xff] %v822_v21  ;;  %v931_v21 = vrot.slane %v919_v14, 2 }
 0x139   : > { %788 = vmatmul.f32.gmra.mxu1 %v2095_v55 }
 0x13b   : > { %v759_v26 = vld.sshfl [vmem:[#allocation1] sm:$0xff pattern:$0x73625140] }
 0x13c   : > { %761 = vst [vmem:[#allocation1] ss:$4 sm:$0xff] %v715_v23  ;;  %v932_v23 = vrot.slane %v919_v14, 4 }
 0x13d   : > { %762 = vst [vmem:[#allocation1 + $0x1] ss:$4 sm:$0xff] %v716_v24  ;;  %v1682_v24 = vld [vmem:[%s2593_s3 + $0x2a0] sm:$0xff] }
 0x13f   : > { %v2166_v31 = vld.sshfl [vmem:[#allocation1 + $0x20] sm:$0xff pattern:$0x73625140] }
 0x140   : > { %868 = vst [vmem:[#allocation1 + $0x20] ss:$4 sm:$0xff] %v810_v28  ;;  %v1680_v28 = vld [vmem:[%s2593_s3 + $0x290] sm:$0xff] }
 0x141   : > { %869 = vst [vmem:[#allocation1 + $0x21] ss:$4 sm:$0xff] %v826_v30  ;;  %791 = vmatmul.f32.gmra.mxu1 %v759_v26  ;;  %v1681_v26 = vld [vmem:[%s2593_s3 + $0x298] sm:$0xff]  ;;  %v1679_v30 = vld [vmem:[%s2593_s3 + $0x288] sm:$0xff] }
 0x142   : > { %870 = vst [vmem:[#allocation1 + $0x22] ss:$4 sm:$0xff] %v827_v33  ;;  %v1678_v33 = vld [vmem:[%s2593_s3 + $0x280] sm:$0xff] }
 0x143   : > { %871 = vst [vmem:[#allocation1 + $0x23] ss:$4 sm:$0xff] %v2171_v34  ;;  %v1706_v34 = vld [vmem:[%s2593_s3 + $0x360] sm:$0xff] }
 0x144   : > { %v763_v40 = vld.sshfl [vmem:[#allocation1] sm:$0xff pattern:$0x73625140] }
 0x145   : > { %847 = vst [vmem:[#allocation1] ss:$4 sm:$0xff] %v806_v35  ;;  %v936_v35 = vrot.slane %v2189_v46, 4 }
 0x146   : > { %849 = vst [vmem:[#allocation1 + $0x1] ss:$4 sm:$0xff] %v818_v39  ;;  %v937_v39 = vrot.slane %v922_v32, 2 }
 0x147   : > { %851 = vst [vmem:[#allocation1 + $0x2] ss:$4 sm:$0xff] %v819_v41  ;;  %v1037_v41 = vld [vmem:[#allocation2 + $0x30] sm:$0x3f] }
 0x148   : > { %853 = vst [vmem:[#allocation1 + $0x3] ss:$4 sm:$0xff] %v2118_v4  ;;  %v1689_v4 = vld [vmem:[%s2593_s3 + $0x2d8] sm:$0xff]  ;;  %v1053_v44 = vrot.slane %v1037_v41, 2 }
 0x149   : > { %794 = vmatmul.f32.gmra.mxu1 %v2127_v10  ;;  %999 = vmatpush.msrb.mxu3 %v1689_v4  ;;  %v1687_v10 = vld [vmem:[%s2593_s3 + $0x2c8] sm:$0xff] }
 0x14a   : > { %v2193_v49 = vld.sshfl [vmem:[#allocation1 + $0x20] sm:$0xff pattern:$0x73625140] }
 0x14b   : > { %968 = vst [vmem:[#allocation1 + $0x20] ss:$4 sm:$0xff] %v933_v45  ;;  %1000 = vmatpush.msrb.mxu3 %v1688_v6  ;;  %v1703_v45 = vld [vmem:[%s2593_s3 + $0x348] sm:$0xff] }
 0x14c   : > { %970 = vst [vmem:[#allocation1 + $0x21] ss:$4 sm:$0xff] %v934_v48  ;;  %v1702_v48 = vld [vmem:[%s2593_s3 + $0x340] sm:$0xff]  ;;  %v1723_v6 = vld [vmem:[%s2593_s3 + $0x3e8] sm:$0xff] }
 0x14d   : > { %972 = vst [vmem:[#allocation1 + $0x22] ss:$4 sm:$0xff] %v2189_v46  ;;  %1001 = vmatpush.msrb.mxu3 %v1687_v10  ;;  %v1054_v46 = vrot.slane %v1037_v41, 4  ;;  %v1150_v10 = vld [vmem:[#allocation2 + $0x31] sm:$0x3f] }
 0x14e   : > { %974 = vst [vmem:[#allocation1 + $0x23] ss:$4 sm:$0xff] %v935_v51  ;;  %v1700_v51 = vld [vmem:[%s2593_s3 + $0x330] sm:$0xff] }
 0x14f   : > { %v862_v55 = vld.sshfl [vmem:[#allocation1] sm:$0xff pattern:$0x73625140]  ;;  %1002 = vmatpush.msrb.mxu3 %v1686_v12  ;;  %v1721_v12 = vld [vmem:[%s2593_s3 + $0x3d8] sm:$0xff] }
 0x150   : > { %864 = vst [vmem:[#allocation1] ss:$4 sm:$0xff] %v823_v53  ;;  %898 = vmatmul.f32.vlgmr.msrb.gmra.mxu2 %v862_v55  ;;  %v942_v53 = vrot.slane %v2228_v5, 4 }
 0x151   : > { %865 = vst [vmem:[#allocation1 + $0x1] ss:$4 sm:$0xff] %v809_v52  ;;  %797 = vmatmul.f32.gmra.mxu1 %v763_v40  ;;  %1003 = vmatpush.msrb.mxu3 %v1685_v13  ;;  %v938_v40 = vrot.slane %v922_v32, 4  ;;  %v2317_v52 = vld [vmem:[#allocation2 + $0x19] sm:$0x3f] }
 0x152   : > { %866 = vst [vmem:[#allocation1 + $0x2] ss:$4 sm:$0xff] %v824_v56  ;;  %v1160_v55 = vrot.slane %v2317_v52, 2  ;;  %v2324_v56 = vld [vmem:[#allocation2 + $0x21] sm:$0x3f]  ;;  %v1161_v58 = vrot.slane %v2317_v52, 4 }
 0x153   : > { %867 = vst [vmem:[#allocation1 + $0x3] ss:$4 sm:$0xff] %v825_v59  ;;  %1004 = vmatpush.msrb.mxu3 %v1684_v18  ;;  %v1162_v63 = vrot.slane %v2324_v56, 2  ;;  %v1720_v18 = vld [vmem:[%s2593_s3 + $0x3d0] sm:$0xff] }
 0x155   : > { %v2223_v2 = vld.sshfl [vmem:[#allocation1 + $0x20] sm:$0xff pattern:$0x73625140]  ;;  %1005 = vmatpush.msrb.mxu3 %v1683_v20 }
 0x156   : > { %981 = vst [vmem:[#allocation1 + $0x20] ss:$4 sm:$0xff] %v923_v60  ;;  %v1697_v60 = vld [vmem:[%s2593_s3 + $0x318] sm:$0xff] }
 0x157   : > { %982 = vst [vmem:[#allocation1 + $0x21] ss:$4 sm:$0xff] %v939_v1  ;;  %1006 = vmatpush.msrb.mxu3 %v1682_v24  ;;  %v1724_v1 = vld [vmem:[%s2593_s3 + $0x3f0] sm:$0xff]  ;;  %v1167_v24 = vrot.slane %v1150_v10, 4 }
 0x158   : > { %983 = vst [vmem:[#allocation1 + $0x22] ss:$4 sm:$0xff] %v940_v3  ;;  %901 = vmatmul.f32.gmra.mxu2 %v2166_v31  ;;  %v1707_v31 = vld [vmem:[%s2593_s3 + $0x368] sm:$0xff]  ;;  %v1045_v3 = vrot.slane %v1033_v62, 2  ;;  %1223 = vmatpush.msra.mxu1 %v1724_v1  ;;  %v1710_v1 = vld [vmem:[%s2593_s3 + $0x380] sm:$0xff] }
 0x159   : > { %984 = vst [vmem:[#allocation1 + $0x23] ss:$4 sm:$0xff] %v2228_v5  ;;  %1007 = vmatpush.msrb.mxu3 %v1681_v26  ;;  %1111 = vmatpush.msrb.mxu0 %v1707_v31  ;;  %v1695_v5 = vld [vmem:[%s2593_s3 + $0x308] sm:$0xff]  ;;  %v1036_v26 = vld [vmem:[#allocation2 + $0x28] sm:$0x3f]  ;;  %v1717_v31 = vld [vmem:[%s2593_s3 + $0x3b8] sm:$0xff] }
 0x15a   : > { %v872_v9 = vld.sshfl [vmem:[#allocation1] sm:$0xff pattern:$0x73625140]  ;;  %1224 = vmatpush.msra.mxu1 %v1723_v6 }
 0x15b   : > { %874 = vst [vmem:[#allocation1] ss:$4 sm:$0xff] %v828_v7  ;;  %1008 = vmatpush.msrb.mxu3 %v1680_v28  ;;  %1112 = vmatpush.msrb.mxu0 %v1706_v34  ;;  %v1046_v7 = vrot.slane %v1033_v62, 4  ;;  %v1050_v28 = vrot.slane %v2255_v19, 4 }
 0x15c   : > { %875 = vst [vmem:[#allocation1 + $0x1] ss:$4 sm:$0xff] %v829_v8  ;;  %v1694_v8 = vld [vmem:[%s2593_s3 + $0x300] sm:$0xff] }
 0x15d   : > { %1009 = vmatpush.msrb.mxu3 %v1679_v30  ;;  %1113 = vmatpush.msrb.mxu0 %v1705_v37  ;;  %v1716_v37 = vld [vmem:[%s2593_s3 + $0x3b0] sm:$0xff] }
 0x15f   : > { %1010 = vmatpush.msrb.mxu3 %v1678_v33  ;;  %v1051_v33 = vrot.slane %v1036_v26, 2 }
 0x160   : > { %v2250_v17 = vld.sshfl [vmem:[#allocation1 + $0x20] sm:$0xff pattern:$0x73625140]  ;;  %904 = vmatmul.f32.gmra.mxu2 %v872_v9 }
 0x161   : > { %1082 = vst [vmem:[#allocation1 + $0x20] ss:$4 sm:$0xff] %v1047_v15  ;;  %v1722_v9 = vld [vmem:[%s2593_s3 + $0x3e0] sm:$0xff]  ;;  %v1741_v15 = vld [vmem:[%s2593_s3 + $0x478] sm:$0xff] }
 0x162   : > { %1084 = vst [vmem:[#allocation1 + $0x21] ss:$4 sm:$0xff] %v1048_v16  ;;  %1225 = vmatpush.msra.mxu1 %v1722_v9  ;;  %1335 = vmatpush.msra.mxu2 %v1741_v15  ;;  %v1728_v15 = vld [vmem:[%s2593_s3 + $0x410] sm:$0xff] }
 0x163   : > { %v876_v22 = vld.sshfl [vmem:[#allocation1] sm:$0xff pattern:$0x73625140]  ;;  %1086 = vst [vmem:[#allocation1 + $0x22] ss:$4 sm:$0xff] %v2255_v19  ;;  %v1736_v19 = vld [vmem:[%s2593_s3 + $0x450] sm:$0xff] }
 0x164   : > { %960 = vst [vmem:[#allocation1] ss:$4 sm:$0xff] %v919_v14  ;;  %v2362_v14 = vld [vmem:[#allocation2 + $0x39] sm:$0x3f]  ;;  %1226 = vmatpush.msra.mxu1 %v1721_v12 }
 0x165   : > { %962 = vst [vmem:[#allocation1 + $0x1] ss:$4 sm:$0xff] %v931_v21  ;;  %v1739_v21 = vld [vmem:[%s2593_s3 + $0x468] sm:$0xff] }
 0x166   : > { %964 = vst [vmem:[#allocation1 + $0x2] ss:$4 sm:$0xff] %v932_v23  ;;  %v1719_v23 = vld [vmem:[%s2593_s3 + $0x3c8] sm:$0xff]  ;;  %1227 = vmatpush.msra.mxu1 %v1720_v18 }
 0x167   : > { %966 = vst [vmem:[#allocation1 + $0x3] ss:$4 sm:$0xff] %v2185_v43  ;;  %v1704_v43 = vld [vmem:[%s2593_s3 + $0x350] sm:$0xff]  ;;  %v1727_v18 = vld [vmem:[%s2593_s3 + $0x408] sm:$0xff] }
 0x168   : > { %1088 = vst [vmem:[#allocation1 + $0x23] ss:$4 sm:$0xff] %v1049_v25  ;;  %907 = vmatmul.f32.gmra.mxu2 %v2193_v49  ;;  %1114 = vmatpush.msrb.mxu0 %v1704_v43  ;;  %v1701_v49 = vld [vmem:[%s2593_s3 + $0x338] sm:$0xff]  ;;  %v1738_v25 = vld [vmem:[%s2593_s3 + $0x460] sm:$0xff]  ;;  %v2415_v43 = vld [vmem:[#allocation2 + $0x22] sm:$0x3f] }
 0x169   : > { %1228 = vmatpush.msra.mxu1 %v1719_v23  ;;  %v1149_v23 = vld [vmem:[#allocation2 + $0x29] sm:$0x3f] }
 0x16a   : > { %1115 = vmatpush.msrb.mxu0 %v1703_v45 }
 0x16b   : > { %1229 = vmatpush.msra.mxu1 %v1718_v27  ;;  %v1169_v27 = vrot.slane %v2362_v14, 4 }
 0x16c   : > { %1116 = vmatpush.msrb.mxu0 %v1702_v48  ;;  %v1714_v48 = vld [vmem:[%s2593_s3 + $0x3a0] sm:$0xff] }
 0x16d   : > { %1230 = vmatpush.msra.mxu1 %v1717_v31 }
 0x16e   : > { %v975_v36 = vld.sshfl [vmem:[#allocation1] sm:$0xff pattern:$0x73625140]  ;;  %1117 = vmatpush.msrb.mxu0 %v1701_v49 }
 0x16f   : > { %977 = vst [vmem:[#allocation1] ss:$4 sm:$0xff] %v936_v35  ;;  %1011 = vmatmul.f32.vlgmr.msrb.gmra.mxu3 %v975_v36  ;;  %v2295_v42 = vld.sshfl [vmem:[#allocation1 + $0x20] sm:$0xff pattern:$0x73625140]  ;;  %v1052_v36 = vrot.slane %v1036_v26, 4  ;;  %1231 = vmatpush.msra.mxu1 %v1716_v37 }
 0x170   : > { %978 = vst [vmem:[#allocation1 + $0x1] ss:$4 sm:$0xff] %v922_v32  ;;  %910 = vmatmul.f32.gmra.mxu2 %v876_v22  ;;  %1118 = vmatpush.msrb.mxu0 %v1700_v51  ;;  %v1166_v22 = vrot.slane %v1150_v10, 2  ;;  %v2403_v35 = vld [vmem:[#allocation2 + $0x1a] sm:$0x3f]  ;;  %v1275_v51 = vrot.slane %v2415_v43, 2 }
 0x171   : > { %979 = vst [vmem:[#allocation1 + $0x2] ss:$4 sm:$0xff] %v937_v39  ;;  %v1735_v39 = vld [vmem:[%s2593_s3 + $0x448] sm:$0xff]  ;;  %v1274_v45 = vrot.slane %v2403_v35, 4 }
 0x172   : > { %980 = vst [vmem:[#allocation1 + $0x3] ss:$4 sm:$0xff] %v938_v40  ;;  %1119 = vmatpush.msrb.mxu0 %v1699_v38  ;;  %v1715_v40 = vld [vmem:[%s2593_s3 + $0x3a8] sm:$0xff] }
 0x173   : > { %1095 = vst [vmem:[#allocation1 + $0x20] ss:$4 sm:$0xff] %v1037_v41  ;;  %v1273_v41 = vrot.slane %v2403_v35, 2  ;;  %1232 = vmatpush.msra.mxu1 %v1715_v40 }
 0x174   : > { %1096 = vst [vmem:[#allocation1 + $0x21] ss:$4 sm:$0xff] %v1053_v44  ;;  %1120 = vmatpush.msrb.mxu0 %v1698_v57  ;;  %v1734_v44 = vld [vmem:[%s2593_s3 + $0x440] sm:$0xff] }
 0x175   : > { %1097 = vst [vmem:[#allocation1 + $0x22] ss:$4 sm:$0xff] %v1054_v46  ;;  %1233 = vmatpush.msra.mxu1 %v1714_v48 }
 0x176   : > { %1098 = vst [vmem:[#allocation1 + $0x23] ss:$4 sm:$0xff] %v2303_v47  ;;  %1121 = vmatpush.msrb.mxu0 %v1697_v60  ;;  %v564_v13 = vpop.f32.mrf.mxu2  ;;  %v1712_v60 = vld [vmem:[%s2593_s3 + $0x390] sm:$0xff] }
 0x177   : > { %1014 = vmatmul.f32.gmra.mxu3 %v2223_v2  ;;  %v497_v2 = vpop.f32.mrf.mxu1 }
 0x178   : > { %1122 = vmatpush.msrb.mxu0 %v1696_v0  ;;  %v2367_v16 = vadd.f32 %v564_v13, %v497_v2  ;;  %v1729_v2 = vld [vmem:[%s2593_s3 + $0x418] sm:$0xff]  ;;  %v1264_v13 = vld [vmem:[#allocation2 + $0x3a] sm:$0x3f] }
 0x179   : > { %v985_v54 = vld.sshfl [vmem:[#allocation1] sm:$0xff pattern:$0x73625140]  ;;  %v1282_v37 = vrot.slane %v1264_v13, 4 }
 0x17a   : > { %987 = vst [vmem:[#allocation1] ss:$4 sm:$0xff] %v941_v50  ;;  %1123 = vmatpush.msrb.mxu0 %v1695_v5  ;;  %v1733_v50 = vld [vmem:[%s2593_s3 + $0x438] sm:$0xff] }
 0x17b   : > { %988 = vst [vmem:[#allocation1 + $0x1] ss:$4 sm:$0xff] %v942_v53  ;;  %v1055_v53 = vrot.slane %v2303_v47, 2 }
 0x17c   : > { %1124 = vmatpush.msrb.mxu0 %v1694_v8 }
 0x17d   : > { %v2330_v59 = vld.sshfl [vmem:[#allocation1 + $0x20] sm:$0xff pattern:$0x73625140] }
 0x17e   : > { %1195 = vst [vmem:[#allocation1 + $0x20] ss:$4 sm:$0xff] %v1160_v55  ;;  %v567_v32 = vpop.f32.mrf.mxu2  ;;  %v1056_v55 = vrot.slane %v2303_v47, 4  ;;  %v1711_v47 = vld [vmem:[%s2593_s3 + $0x388] sm:$0xff] }
 0x17f   : > { %1197 = vst [vmem:[#allocation1 + $0x21] ss:$4 sm:$0xff] %v1161_v58  ;;  %1017 = vmatmul.f32.gmra.mxu3 %v985_v54  ;;  %v1713_v54 = vld [vmem:[%s2593_s3 + $0x398] sm:$0xff]  ;;  %v1732_v58 = vld [vmem:[%s2593_s3 + $0x430] sm:$0xff] }
 0x180   : > { %1199 = vst [vmem:[#allocation1 + $0x22] ss:$4 sm:$0xff] %v2324_v56  ;;  %1234 = vmatpush.msra.mxu1 %v1713_v54 }
 0x181   : > { %1201 = vst [vmem:[#allocation1 + $0x23] ss:$4 sm:$0xff] %v1162_v63  ;;  %v1263_v63 = vld [vmem:[#allocation2 + $0x32] sm:$0x3f] }
 0x182   : > { %v989_v4 = vld.sshfl [vmem:[#allocation1] sm:$0xff pattern:$0x73625140]  ;;  %1235 = vmatpush.msra.mxu1 %v1712_v60  ;;  %v1279_v5 = vrot.slane %v1263_v63, 2  ;;  %v1280_v8 = vrot.slane %v1263_v63, 4 }
 0x183   : > { %1074 = vst [vmem:[#allocation1] ss:$4 sm:$0xff] %v1033_v62  ;;  %v1730_v62 = vld [vmem:[%s2593_s3 + $0x420] sm:$0xff] }
 0x184   : > { %1076 = vst [vmem:[#allocation1 + $0x1] ss:$4 sm:$0xff] %v1045_v3  ;;  %1236 = vmatpush.msra.mxu1 %v1711_v47 }
 0x185   : > { %1078 = vst [vmem:[#allocation1 + $0x2] ss:$4 sm:$0xff] %v1046_v7 }
 0x186   : > { %1080 = vst [vmem:[#allocation1 + $0x3] ss:$4 sm:$0xff] %v2239_v11  ;;  %v1740_v11 = vld [vmem:[%s2593_s3 + $0x470] sm:$0xff]  ;;  %v570_v38 = vpop.f32.mrf.mxu2  ;;  %1237 = vmatpush.msra.mxu1 %v1710_v1 }
 0x187   : > { %1020 = vmatmul.f32.gmra.mxu3 %v2250_v17  ;;  %v500_v17 = vpop.f32.mrf.mxu1  ;;  %1336 = vmatpush.msra.mxu2 %v1740_v11 }
 0x188   : > { %v2376_v20 = vld.sshfl [vmem:[#allocation1 + $0x20] sm:$0xff pattern:$0x73625140]  ;;  %v2398_v34 = vadd.f32 %v567_v32, %v500_v17  ;;  %v1276_v32 = vrot.slane %v2415_v43, 4 }
 0x189   : > { %1211 = vst [vmem:[#allocation1 + $0x23] ss:$4 sm:$0xff] %v2362_v14  ;;  %1337 = vmatpush.msra.mxu2 %v1739_v21  ;;  %v1726_v17 = vld [vmem:[%s2593_s3 + $0x400] sm:$0xff] }
 0x18a   : > { %1208 = vst [vmem:[#allocation1 + $0x20] ss:$4 sm:$0xff] %v1150_v10 }
 0x18b   : > { %1209 = vst [vmem:[#allocation1 + $0x21] ss:$4 sm:$0xff] %v1166_v22  ;;  %1338 = vmatpush.msra.mxu2 %v1738_v25 }
 0x18c   : > { %1210 = vst [vmem:[#allocation1 + $0x22] ss:$4 sm:$0xff] %v1167_v24  ;;  %v1163_v24 = vrot.slane %v2324_v56, 4 }
 0x18d   : > { %v1089_v30 = vld.sshfl [vmem:[#allocation1] sm:$0xff pattern:$0x73625140]  ;;  %1339 = vmatpush.msra.mxu2 %v1737_v29  ;;  %v1259_v29 = vld [vmem:[#allocation2 + $0x12] sm:$0x3f] }
 0x18e   : > { %1091 = vst [vmem:[#allocation1] ss:$4 sm:$0xff] %v1050_v28  ;;  %1125 = vmatmul.f32.vlgmr.msrb.gmra.mxu0 %v1089_v30  ;;  %v573_v3 = vpop.f32.mrf.mxu2  ;;  %v1271_v56 = vrot.slane %v1259_v29, 2  ;;  %v1272_v31 = vrot.slane %v1259_v29, 4 }
 0x18f   : > { %1092 = vst [vmem:[#allocation1 + $0x1] ss:$4 sm:$0xff] %v1036_v26  ;;  %1023 = vmatmul.f32.gmra.mxu3 %v989_v4  ;;  %1340 = vmatpush.msra.mxu2 %v1736_v19  ;;  %v503_v46 = vpop.f32.mrf.mxu1  ;;  %v1146_v4 = vld [vmem:[#allocation2 + $0x11] sm:$0x3f]  ;;  %v1164_v26 = vrot.slane %v1149_v23, 2 }
 0x190   : > { %1093 = vst [vmem:[#allocation1 + $0x2] ss:$4 sm:$0xff] %v1051_v33  ;;  %v2436_v57 = vadd.f32 %v570_v38, %v503_v46  ;;  %v1158_v9 = vrot.slane %v1146_v4, 2  ;;  %v1159_v12 = vrot.slane %v1146_v4, 4 }
 0x191   : > { %1094 = vst [vmem:[#allocation1 + $0x3] ss:$4 sm:$0xff] %v1052_v36  ;;  %1341 = vmatpush.msra.mxu2 %v1735_v39  ;;  %v1281_v36 = vrot.slane %v1264_v13, 2 }
 0x193   : > { %v2424_v49 = vld.sshfl [vmem:[#allocation1 + $0x20] sm:$0xff pattern:$0x73625140]  ;;  %1342 = vmatpush.msra.mxu2 %v1734_v44 }
 0x194   : > { %1308 = vst [vmem:[#allocation1 + $0x20] ss:$4 sm:$0xff] %v1273_v41 }
 0x195   : > { %1310 = vst [vmem:[#allocation1 + $0x21] ss:$4 sm:$0xff] %v1274_v45  ;;  %1343 = vmatpush.msra.mxu2 %v1733_v50  ;;  %v672_v41 = vpop.f32.mrf.mxu3  ;;  %v1478_v45 = vld [vmem:[%s2595_s5 + $0x78] sm:$0xff]  ;;  %v1477_v50 = vld [vmem:[%s2595_s5 + $0x70] sm:$0xff] }
 0x196   : > { %1128 = vmatmul.f32.gmra.mxu0 %v2295_v42  ;;  %1312 = vst [vmem:[#allocation1 + $0x22] ss:$4 sm:$0xff] %v2415_v43  ;;  %v1731_v42 = vld [vmem:[%s2593_s3 + $0x428] sm:$0xff]  ;;  %v576_v21 = vpop.f32.mrf.mxu2  ;;  %1746 = vmatpush.msra.mxu3 %v1478_v45 }
 0x197   : > { %1314 = vst [vmem:[#allocation1 + $0x23] ss:$4 sm:$0xff] %v1275_v51  ;;  %1344 = vmatpush.msra.mxu2 %v1732_v58  ;;  %v506_v0 = vpop.f32.mrf.mxu1  ;;  %1479 = vmatpush.msra.mxu0 %v1478_v45  ;;  %v1476_v51 = vld [vmem:[%s2595_s5 + $0x68] sm:$0xff] }
 0x198   : > { %v1099_v61 = vld.sshfl [vmem:[#allocation1] sm:$0xff pattern:$0x73625140]  ;;  %v2460_v6 = vadd.f32 %v573_v3, %v506_v0  ;;  %1747 = vmatpush.msra.mxu3 %v1477_v50  ;;  %v1472_v0 = vld [vmem:[%s2595_s5 + $0x48] sm:$0xff] }
 0x199   : > { %1101 = vst [vmem:[#allocation1] ss:$4 sm:$0xff] %v1055_v53  ;;  %1345 = vmatpush.msra.mxu2 %v1731_v42  ;;  %1480 = vmatpush.msra.mxu0 %v1477_v50  ;;  %v1474_v42 = vld [vmem:[%s2595_s5 + $0x58] sm:$0xff] }
 0x19a   : > { %1102 = vst [vmem:[#allocation1 + $0x1] ss:$4 sm:$0xff] %v1056_v55  ;;  %1748 = vmatpush.msra.mxu3 %v1476_v51 }
 0x19b   : > { %1346 = vmatpush.msra.mxu2 %v1730_v62  ;;  %1481 = vmatpush.msra.mxu0 %v1476_v51  ;;  %v1473_v62 = vld [vmem:[%s2595_s5 + $0x50] sm:$0xff] }
 0x19d   : > { %1347 = vmatpush.msra.mxu2 %v1729_v2  ;;  %v675_v44 = vpop.f32.mrf.mxu3  ;;  %v1471_v2 = vld [vmem:[%s2595_s5 + $0x40] sm:$0xff] }
 0x19e   : > { %1131 = vmatmul.f32.gmra.mxu0 %v1099_v61  ;;  %v1316_v7 = vld.sshfl [vmem:[#allocation1 + $0x20] sm:$0xff pattern:$0x73625140] }
 0x19f   : > { %1321 = vst [vmem:[#allocation1 + $0x20] ss:$4 sm:$0xff] %v1263_v63  ;;  %v509_v11 = vpop.f32.mrf.mxu1  ;;  %1348 = vmatpush.msra.mxu2 %v1728_v15  ;;  %v1475_v61 = vld [vmem:[%s2595_s5 + $0x60] sm:$0xff] }
 0x1a0   : > { %1322 = vst [vmem:[#allocation1 + $0x21] ss:$4 sm:$0xff] %v1279_v5  ;;  %v2470_v22 = vadd.f32 %v576_v21, %v509_v11  ;;  %1482 = vmatpush.msra.mxu0 %v1475_v61  ;;  %1749 = vmatpush.msra.mxu3 %v1475_v61  ;;  %v1466_v11 = vld [vmem:[%s2595_s5 + $0x18] sm:$0xff] }
 0x1a1   : > { %v1103_v10 = vld.sshfl [vmem:[#allocation1] sm:$0xff pattern:$0x73625140]  ;;  %1323 = vst [vmem:[#allocation1 + $0x22] ss:$4 sm:$0xff] %v1280_v8  ;;  %1349 = vmatpush.msra.mxu2 %v1727_v18  ;;  %v1469_v8 = vld [vmem:[%s2595_s5 + $0x30] sm:$0xff] }
 0x1a2   : > { %1187 = vst [vmem:[#allocation1] ss:$4 sm:$0xff] %v1146_v4  ;;  %1483 = vmatpush.msra.mxu0 %v1474_v42  ;;  %1750 = vmatpush.msra.mxu3 %v1474_v42  ;;  %v1470_v4 = vld [vmem:[%s2595_s5 + $0x38] sm:$0xff] }
 0x1a3   : > { %1189 = vst [vmem:[#allocation1 + $0x1] ss:$4 sm:$0xff] %v1158_v9  ;;  %1350 = vmatpush.msra.mxu2 %v1726_v17  ;;  %v688_v17 = vadd.f32 %v675_v44, %v2398_v34 }
 0x1a4   : > { %1191 = vst [vmem:[#allocation1 + $0x2] ss:$4 sm:$0xff] %v1159_v12  ;;  %1484 = vmatpush.msra.mxu0 %v1473_v62  ;;  %1751 = vmatpush.msra.mxu3 %v1473_v62 }
 0x1a5   : > { %1193 = vst [vmem:[#allocation1 + $0x3] ss:$4 sm:$0xff] %v2317_v52  ;;  %v1165_v52 = vrot.slane %v1149_v23, 4 }
 0x1a6   : > { %1134 = vmatmul.f32.gmra.mxu0 %v2330_v59  ;;  %1324 = vst [vmem:[#allocation1 + $0x23] ss:$4 sm:$0xff] %v1264_v13  ;;  %v1168_v59 = vrot.slane %v2362_v14, 2  ;;  %1752 = vmatpush.msra.mxu3 %v1472_v0 }
 0x1a7   : > { %1485 = vmatpush.msra.mxu0 %v1472_v0 }
 0x1a8   : > { %1753 = vmatpush.msra.mxu3 %v1471_v2 }
 0x1a9   : > { %1486 = vmatpush.msra.mxu0 %v1471_v2 }
 0x1aa   : > { %1754 = vmatpush.msra.mxu3 %v1470_v4 }
 0x1ab   : > { %1487 = vmatpush.msra.mxu0 %v1470_v4 }
 0x1ac   : > { %v1202_v25 = vld.sshfl [vmem:[#allocation1] sm:$0xff pattern:$0x73625140]  ;;  %1755 = vmatpush.msra.mxu3 %v1469_v8 }
 0x1ad   : > { %1238 = vmatmul.f32.vlgmr.msra.gmra.mxu1 %v1202_v25  ;;  %1204 = vst [vmem:[#allocation1] ss:$4 sm:$0xff] %v1163_v24  ;;  %1488 = vmatpush.msra.mxu0 %v1469_v8  ;;  %v1465_v24 = vld [vmem:[%s2595_s5 + $0x10] sm:$0xff] }
 0x1ae   : > { %1205 = vst [vmem:[#allocation1 + $0x1] ss:$4 sm:$0xff] %v1149_v23  ;;  %1137 = vmatmul.f32.gmra.mxu0 %v1103_v10  ;;  %v786_v43 = vpop.f32.mrf.mxu1  ;;  %v1468_v10 = vld [vmem:[%s2595_s5 + $0x28] sm:$0xff] }
 0x1af   : > { %1206 = vst [vmem:[#allocation1 + $0x2] ss:$4 sm:$0xff] %v1164_v26  ;;  %1489 = vmatpush.msra.mxu0 %v1468_v10  ;;  %1756 = vmatpush.msra.mxu3 %v1468_v10 }
 0x1b0   : > { %1207 = vst [vmem:[#allocation1 + $0x3] ss:$4 sm:$0xff] %v1165_v52 }
 0x1b5   : > { %1241 = vmatmul.f32.gmra.mxu1 %v2376_v20  ;;  %v1262_v20 = vld [vmem:[#allocation2 + $0x2a] sm:$0x3f] }
 0x1b6   : > { %v1277_v14 = vrot.slane %v1262_v20, 2  ;;  %v1278_v19 = vrot.slane %v1262_v20, 4  ;;  %v789_v46 = vpop.f32.mrf.mxu1 }
 0x1b7   : > { %v1212_v28 = vld.sshfl [vmem:[#allocation1] sm:$0xff pattern:$0x73625140]  ;;  %v802_v26 = vadd.f32 %v789_v46, %v688_v17 }
 0x1b8   : > { %1214 = vst [vmem:[#allocation1] ss:$4 sm:$0xff] %v1168_v59  ;;  %v2547_v59 = vld [vmem:[%s2594_s4] ss:$0 sm:$0xff] }
 0x1b9   : > { %1215 = vst [vmem:[#allocation1 + $0x1] ss:$4 sm:$0xff] %v1169_v27  ;;  %v1464_v27 = vld [vmem:[%s2595_s5 + $0x8] sm:$0xff] }
 0x1bd   : > { %1244 = vmatmul.f32.gmra.mxu1 %v1212_v28  ;;  %v1789_v28 = vmov 0.0  }
 0x1be   : > { %v2493_v53 = vpop.f32.mrf.mxu1  ;;  %1386 = vst [vmem:[#allocation3] sm:$0x1] %v1789_v28 }
 0x1bf   : > { %1392 = vst [vmem:[#allocation3 + $0x7] sm:$0x1] %v1789_v28 }
 0x1c0   : > { %v1216_v30 = vld.sshfl [vmem:[#allocation1] sm:$0xff pattern:$0x73625140]  ;;  %1387 = vst [vmem:[#allocation3 + $0x8] sm:$0x1] %v1789_v28 }
 0x1c1   : > { %1300 = vst [vmem:[#allocation1] ss:$4 sm:$0xff] %v1259_v29 }
 0x1c2   : > { %1302 = vst [vmem:[#allocation1 + $0x1] ss:$4 sm:$0xff] %v1271_v56 }
 0x1c3   : > { %1304 = vst [vmem:[#allocation1 + $0x2] ss:$4 sm:$0xff] %v1272_v31 }
 0x1c4   : > { %1306 = vst [vmem:[#allocation1 + $0x3] ss:$4 sm:$0xff] %v2403_v35  ;;  %v1326_v35 = vld.sshfl [vmem:[#allocation1 + $0x20] sm:$0xff pattern:$0x73625140] }
 0x1c5   : > { %1247 = vmatmul.f32.gmra.mxu1 %v2424_v49  ;;  %v2485_v49 = vpop.f32.mrf.mxu3  ;;  %1388 = vst [vmem:[#allocation3 + $0x10] sm:$0x1] %v1789_v28 }
 0x1c6   : > { %v2497_v55 = vpop.f32.mrf.mxu1  ;;  %1389 = vst [vmem:[#allocation3 + $0x18] sm:$0x1] %v1789_v28 }
 0x1c7   : > { %1390 = vst [vmem:[#allocation3 + $0x20] sm:$0x1] %v1789_v28 }
 0x1c8   : > { %1391 = vst [vmem:[#allocation3 + $0x28] sm:$0x1] %v1789_v28 }
 0x1c9   : > { %1393 = vst [vmem:[#allocation3 + $0xf] sm:$0x1] %v1789_v28 }
 0x1ca   : > { %1394 = vst [vmem:[#allocation3 + $0x17] sm:$0x1] %v1789_v28 }
 0x1cb   : > { %v1315_v33 = vld.sshfl [vmem:[#allocation1] sm:$0xff pattern:$0x73625140]  ;;  %1395 = vst [vmem:[#allocation3 + $0x1f] sm:$0x1] %v1789_v28 }
 0x1cc   : > { %1351 = vmatmul.f32.vlgmr.msra.gmra.mxu2 %v1315_v33  ;;  %1317 = vst [vmem:[#allocation1] ss:$4 sm:$0xff] %v1276_v32  ;;  %v689_v32 = vadd.f32 %v2485_v49, %v2436_v57 }
 0x1cd   : > { %1318 = vst [vmem:[#allocation1 + $0x1] ss:$4 sm:$0xff] %v1262_v20  ;;  %1250 = vmatmul.f32.gmra.mxu1 %v1216_v30  ;;  %v2495_v38 = vpop.f32.mrf.mxu3  ;;  %v1463_v30 = vld [vmem:[%s2595_s5] sm:$0xff] }
 0x1ce   : > { %1319 = vst [vmem:[#allocation1 + $0x2] ss:$4 sm:$0xff] %v1277_v14  ;;  %v2509_v47 = vpop.f32.mrf.mxu1  ;;  %v690_v49 = vadd.f32 %v2495_v38, %v2460_v6 }
 0x1cf   : > { %1320 = vst [vmem:[#allocation1 + $0x3] ss:$4 sm:$0xff] %v1278_v19 }
 0x1d0   : > { %1396 = vst [vmem:[#allocation3 + $0x27] sm:$0x1] %v1789_v28 }
 0x1d1   : > { %1397 = vst [vmem:[#allocation3 + $0x2f] sm:$0x1] %v1789_v28 }
 0x1d3   : > { %v899_v48 = vpop.f32.mrf.mxu2 }
 0x1d4   : > { %1354 = vmatmul.f32.gmra.mxu2 %v1316_v7  ;;  %v687_v7 = vadd.f32 %v672_v41, %v2367_v16  ;;  %v1467_v16 = vld [vmem:[%s2595_s5 + $0x20] sm:$0xff] }
 0x1d5   : > { %v2501_v60 = vpop.f32.mrf.mxu3  ;;  %1490 = vmatpush.msra.mxu0 %v1467_v16  ;;  %1757 = vmatpush.msra.mxu3 %v1467_v16 }
 0x1d6   : > { %v1325_v39 = vld.sshfl [vmem:[#allocation1] sm:$0xff pattern:$0x73625140]  ;;  %v801_v9 = vadd.f32 %v786_v43, %v687_v7 }
 0x1d7   : > { %1327 = vst [vmem:[#allocation1] ss:$4 sm:$0xff] %v1281_v36  ;;  %1491 = vmatpush.msra.mxu0 %v1466_v11  ;;  %1758 = vmatpush.msra.mxu3 %v1466_v11  ;;  %v803_v36 = vadd.f32 %v2493_v53, %v689_v32 }
 0x1d8   : > { %1328 = vst [vmem:[#allocation1 + $0x1] ss:$4 sm:$0xff] %v1282_v37  ;;  %v914_v13 = vadd.f32 %v899_v48, %v801_v9 }
 0x1d9   : > { %1492 = vmatpush.msra.mxu0 %v1465_v24  ;;  %1759 = vmatpush.msra.mxu3 %v1465_v24 }
 0x1db   : > { %v902_v54 = vpop.f32.mrf.mxu2  ;;  %1493 = vmatpush.msra.mxu0 %v1464_v27  ;;  %1760 = vmatpush.msra.mxu3 %v1464_v27 }
 0x1dc   : > { %1357 = vmatmul.f32.gmra.mxu2 %v1325_v39  ;;  %v915_v29 = vadd.f32 %v902_v54, %v802_v26  ;;  %v804_v54 = vadd.f32 %v2497_v55, %v690_v49  ;;  %v691_v55 = vadd.f32 %v2501_v60, %v2470_v22 }
 0x1dd   : > { %1494 = vmatpush.msra.mxu0 %v1463_v30  ;;  %1761 = vmatpush.msra.mxu3 %v1463_v30 }
 0x1de   : > { %v805_v9 = vadd.f32 %v2509_v47, %v691_v55  ;;  %v1780_v55 = vld [vmem:[%s1853_s14 + $0x30] sm:$0xff] }
 0x1df   : > { %v1329_v40 = vld.sshfl [vmem:[#allocation1] sm:$0xff pattern:$0x73625140] }
 0x1e3   : > { %v2499_v58 = vpop.f32.mrf.mxu2 }
 0x1e4   : > { %1360 = vmatmul.f32.gmra.mxu2 %v1326_v35  ;;  %v916_v57 = vadd.f32 %v2499_v58, %v803_v36 }
 0x1eb   : > { %v2514_v63 = vpop.f32.mrf.mxu2 }
 0x1ec   : > { %1363 = vmatmul.f32.gmra.mxu2 %v1329_v40  ;;  %v917_v2 = vadd.f32 %v2514_v63, %v804_v54 }
 0x1f2   : > { %v1012_v1 = vpop.f32.mrf.mxu3 }
 0x1f3   : > { %v2532_v12 = vpop.f32.mrf.mxu2  ;;  %v1027_v18 = vadd.f32 %v1012_v1, %v914_v13 }
 0x1fa   : > { %v1015_v15 = vpop.f32.mrf.mxu3 }
 0x1fb   : > { %v1028_v31 = vadd.f32 %v1015_v15, %v915_v29 }
 0x202   : > { %v1018_v33 = vpop.f32.mrf.mxu3 }
 0x203   : > { %v1029_v46 = vadd.f32 %v1018_v33, %v916_v57 }
 0x20a   : > { %v1021_v53 = vpop.f32.mrf.mxu3 }
 0x20b   : > { %v1126_v3 = vpop.f32.mrf.mxu0  ;;  %v1030_v4 = vadd.f32 %v1021_v53, %v917_v2 }
 0x20c   : > { %v1141_v23 = vadd.f32 %v1126_v3, %v1027_v18 }
 0x212   : > { %v1024_v16 = vpop.f32.mrf.mxu3 }
 0x213   : > { %v1129_v21 = vpop.f32.mrf.mxu0 }
 0x214   : > { %v1142_v14 = vadd.f32 %v1129_v21, %v1028_v31  ;;  %v918_v21 = vadd.f32 %v2532_v12, %v805_v9 }
 0x216   : > { %v1031_v22 = vadd.f32 %v1024_v16, %v918_v21 }
 0x21b   : > { %v1132_v37 = vpop.f32.mrf.mxu0 }
 0x21c   : > { %v1143_v50 = vadd.f32 %v1132_v37, %v1029_v46 }
 0x223   : > { %v1135_v62 = vpop.f32.mrf.mxu0 }
 0x224   : > { %v1144_v7 = vadd.f32 %v1135_v62, %v1030_v4 }
 0x22a   : > { %v1239_v5 = vpop.f32.mrf.mxu1 }
 0x22b   : > { %v1254_v52 = vadd.f32 %v1239_v5, %v1141_v23  ;;  %v1138_v24 = vpop.f32.mrf.mxu0 }
 0x232   : > { %v1242_v25 = vpop.f32.mrf.mxu1 }
 0x233   : > { %v1255_v39 = vadd.f32 %v1242_v25, %v1142_v14  ;;  %v1145_v25 = vadd.f32 %v1138_v24, %v1031_v22 }
 0x23a   : > { %v1245_v43 = vpop.f32.mrf.mxu1 }
 0x23b   : > { %v1256_v61 = vadd.f32 %v1245_v43, %v1143_v50 }
 0x242   : > { %v1248_v38 = vpop.f32.mrf.mxu1 }
 0x243   : > { %v1257_v10 = vadd.f32 %v1248_v38, %v1144_v7 }
 0x24a   : > { %v1251_v47 = vpop.f32.mrf.mxu1 }
 0x24b   : > { %v1258_v27 = vadd.f32 %v1251_v47, %v1145_v25 }
 0x24f   : > { %v1352_v34 = vpop.f32.mrf.mxu2 }
 0x250   : > { %v1367_v56 = vadd.f32 %v1352_v34, %v1254_v52 }
 0x252   : > { %v1376_v20 = vadd.f32 %v2547_v59, %v1367_v56 }
 0x254   : > { %v1381_v19 = vmax.f32 %v1376_v20, 0.0 }
 0x256   : > { %v1403_v35 = vrot.slane %v1381_v19, 2  ;;  %v1404_v40 = vrot.slane %v1381_v19, 4  ;;  %v1405_v41 = vrot.slane %v1381_v19, 6  ;;  %1416 = vst [vmem:[#allocation1] ss:$4 sm:$0xff] %v1381_v19 }
 0x257   : > { %v1355_v44 = vpop.f32.mrf.mxu2 }
 0x258   : > { %1418 = vst [vmem:[#allocation1 + $0x1] ss:$4 sm:$0xff] %v1403_v35  ;;  %v1368_v45 = vadd.f32 %v1355_v44, %v1255_v39  ;;  %v1774_v35 = vld [vmem:[%s2596_s6] ss:$0 sm:$0xff] }
 0x259   : > { %1420 = vst [vmem:[#allocation1 + $0x2] ss:$4 sm:$0xff] %v1404_v40  ;;  %v1775_v40 = vld [vmem:[%s1853_s14 + $0x8] sm:$0xff]  ;;  %v1524_v7 = vadd.f32 %v1780_v55, %v1774_v35 }
 0x25a   : > { %1423 = vst [vmem:[#allocation1 + $0x20] ss:$4 sm:$0xff] %v1405_v41  ;;  %v1377_v48 = vadd.f32 %v2547_v59, %v1368_v45  ;;  %v1519_v41 = vadd.f32 %v1775_v40, %v1774_v35  ;;  %v1776_v45 = vld [vmem:[%s1853_s14 + $0x10] sm:$0xff] }
 0x25b   : > { %v1520_v46 = vadd.f32 %v1776_v45, %v1774_v35 }
 0x25c   : > { %v1382_v51 = vmax.f32 %v1377_v48, 0.0 }
 0x25e   : > { %v1406_v58 = vrot.slane %v1382_v51, 2  ;;  %v1407_v42 = vrot.slane %v1382_v51, 4  ;;  %1425 = vst [vmem:[#allocation1 + $0x21] ss:$4 sm:$0xff] %v1382_v51  ;;  %v1408_v0 = vrot.slane %v1382_v51, 6  ;;  %v1777_v51 = vld [vmem:[%s1853_s14 + $0x18] sm:$0xff] }
 0x25f   : > { %v1358_v1 = vpop.f32.mrf.mxu2  ;;  %v1521_v53 = vadd.f32 %v1777_v51, %v1774_v35 }
 0x260   : > { %1427 = vst [vmem:[#allocation1 + $0x22] ss:$4 sm:$0xff] %v1406_v58  ;;  %v1369_v3 = vadd.f32 %v1358_v1, %v1256_v61  ;;  %v1421_v6 = vld.sshfl [vmem:[#allocation1] sm:$0xff pattern:$0x73625140] }
 0x261   : > { %1451 = vst [vmem:[#allocation3 + $0x1] sm:$0x3f] %v1421_v6 }
 0x262   : > { %v1378_v5 = vadd.f32 %v2547_v59, %v1369_v3  ;;  %1429 = vst [vmem:[#allocation1] ss:$4 sm:$0xff] %v1407_v42  ;;  %v1778_v42 = vld [vmem:[%s1853_s14 + $0x20] sm:$0xff]  ;;  %v1779_v3 = vld [vmem:[%s1853_s14 + $0x28] sm:$0xff] }
 0x263   : > { %1430 = vst [vmem:[#allocation1 + $0x1] ss:$4 sm:$0xff] %v1408_v0  ;;  %v1522_v62 = vadd.f32 %v1778_v42, %v1774_v35  ;;  %v1523_v6 = vadd.f32 %v1779_v3, %v1774_v35 }
 0x264   : > { %v1383_v8 = vmax.f32 %v1378_v5, 0.0 }
 0x266   : > { %v1409_v13 = vrot.slane %v1383_v8, 2  ;;  %v1410_v63 = vrot.slane %v1383_v8, 4  ;;  %1431 = vst [vmem:[#allocation1 + $0x2] ss:$4 sm:$0xff] %v1383_v8  ;;  %v1411_v15 = vrot.slane %v1383_v8, 6 }
 0x267   : > { %v1361_v18 = vpop.f32.mrf.mxu2  ;;  %v1428_v11 = vld.sshfl [vmem:[#allocation1 + $0x20] sm:$0xff pattern:$0x73625140] }
 0x268   : > { %v1370_v17 = vadd.f32 %v1361_v18, %v1257_v10  ;;  %v1457_v23 = vld [vmem:[#allocation3] sm:$0xff]  ;;  %1452 = vst [vmem:[#allocation3 + $0x9] sm:$0x3f] %v1428_v11 }
 0x269   : > { %1495 = vmatmul.f32.vlgmr.msra.gmra.mxu0 %v1457_v23  ;;  %1433 = vst [vmem:[#allocation1 + $0x20] ss:$4 sm:$0xff] %v1409_v13 }
 0x26a   : > { %v1379_v60 = vadd.f32 %v2547_v59, %v1370_v17  ;;  %1434 = vst [vmem:[#allocation1 + $0x21] ss:$4 sm:$0xff] %v1410_v63 }
 0x26b   : > { %1435 = vst [vmem:[#allocation1 + $0x22] ss:$4 sm:$0xff] %v1411_v15 }
 0x26c   : > { %v1384_v26 = vmax.f32 %v1379_v60, 0.0 }
 0x26d   : > { %v1432_v52 = vld.sshfl [vmem:[#allocation1] sm:$0xff pattern:$0x73625140] }
 0x26e   : > { %v1412_v34 = vrot.slane %v1384_v26, 2  ;;  %v1413_v28 = vrot.slane %v1384_v26, 4  ;;  %1453 = vst [vmem:[#allocation3 + $0x11] sm:$0x3f] %v1432_v52  ;;  %v1414_v56 = vrot.slane %v1384_v26, 6 }
 0x26f   : > { %v1364_v12 = vpop.f32.mrf.mxu2  ;;  %v1458_v29 = vld [vmem:[#allocation3 + $0x8] sm:$0xff]  ;;  %1437 = vst [vmem:[#allocation1] ss:$4 sm:$0xff] %v1384_v26 }
 0x270   : > { %v1371_v30 = vadd.f32 %v1364_v12, %v1258_v27  ;;  %1498 = vmatmul.f32.vlgmr.msra.gmra.mxu3 %v1458_v29  ;;  %1438 = vst [vmem:[#allocation1 + $0x1] ss:$4 sm:$0xff] %v1412_v34 }
 0x271   : > { %1439 = vst [vmem:[#allocation1 + $0x2] ss:$4 sm:$0xff] %v1413_v28 }
 0x272   : > { %v1380_v31 = vadd.f32 %v2547_v59, %v1371_v30  ;;  %v1436_v20 = vld.sshfl [vmem:[#allocation1 + $0x20] sm:$0xff pattern:$0x73625140] }
 0x273   : > { %1454 = vst [vmem:[#allocation3 + $0x19] sm:$0x3f] %v1436_v20 }
 0x274   : > { %v1385_v32 = vmax.f32 %v1380_v31, 0.0  ;;  %1441 = vst [vmem:[#allocation1 + $0x20] ss:$4 sm:$0xff] %v1414_v56 }
 0x275   : > { %v1459_v14 = vld [vmem:[#allocation3 + $0x10] sm:$0xff] }
 0x276   : > { %v1415_v33 = vrot.slane %v1385_v32, 2  ;;  %1442 = vst [vmem:[#allocation1 + $0x21] ss:$4 sm:$0xff] %v1385_v32 }
 0x278   : > { %1501 = vmatmul.f32.gmra.mxu3 %v1459_v14  ;;  %1443 = vst [vmem:[#allocation1 + $0x22] ss:$4 sm:$0xff] %v1415_v33  ;;  %v1440_v19 = vld.sshfl [vmem:[#allocation1] sm:$0xff pattern:$0x73625140] }
 0x279   : > { %1455 = vst [vmem:[#allocation3 + $0x21] sm:$0x3f] %v1440_v19 }
 0x27a   : > { %v1460_v36 = vld [vmem:[#allocation3 + $0x18] sm:$0xff] }
 0x27f   : > { %v1444_v37 = vld.sshfl [vmem:[#allocation1 + $0x20] sm:$0xff pattern:$0x73625140] }
 0x280   : > { %1504 = vmatmul.f32.gmra.mxu3 %v1460_v36  ;;  %1456 = vst [vmem:[#allocation3 + $0x29] sm:$0x3f] %v1444_v37  ;;  %v1461_v39 = vld [vmem:[#allocation3 + $0x20] sm:$0xff] }
 0x287   : > { %v1462_v59 = vld [vmem:[#allocation3 + $0x28] sm:$0xff] }
 0x288   : > { %1507 = vmatmul.f32.gmra.mxu3 %v1461_v39 }
 0x290   : > { %1510 = vmatmul.f32.gmra.mxu3 %v1462_v59 }
 0x2e6   : > { %v1496_v43 = vpop.f32.mrf.mxu0 }
 0x2e7   : > { %v1527_v44 = vadd.f32 %v1519_v41, %v1496_v43 }
 0x2e9   : > { %v1535_v57 = vmax.f32 %v1527_v44, 0.0 }
 0x2eb   : > { %1543 = vst [vmem:[%s1874_s26 + $0x8] sm:$0xff] %v1535_v57 }
 0x2f3   : > { %v1499_v48 = vpop.f32.mrf.mxu3 }
 0x2f4   : > { %v1528_v49 = vadd.f32 %v1520_v46, %v1499_v48 }
 0x2f6   : > { %v1536_v50 = vmax.f32 %v1528_v49, 0.0 }
 0x2f8   : > { %1544 = vst [vmem:[%s1874_s26 + $0x10] sm:$0xff] %v1536_v50 }
 0x2fb   : > { %v1502_v54 = vpop.f32.mrf.mxu3 }
 0x2fc   : > { %v1529_v61 = vadd.f32 %v1521_v53, %v1502_v54 }
 0x2fe   : > { %v1537_v58 = vmax.f32 %v1529_v61, 0.0 }
 0x300   : > { %1545 = vst [vmem:[%s1874_s26 + $0x18] sm:$0xff] %v1537_v58 }
 0x303   : > { %v1505_v0 = vpop.f32.mrf.mxu3 }
 0x304   : > { %v1530_v1 = vadd.f32 %v1522_v62, %v1505_v0 }
 0x306   : > { %v1538_v2 = vmax.f32 %v1530_v1, 0.0 }
 0x308   : > { %1546 = vst [vmem:[%s1874_s26 + $0x20] sm:$0xff] %v1538_v2 }
 0x30b   : > { %v1508_v38 = vpop.f32.mrf.mxu3 }
 0x30c   : > { %v1531_v4 = vadd.f32 %v1523_v6, %v1508_v38 }
 0x30e   : > { %v1539_v5 = vmax.f32 %v1531_v4, 0.0 }
 0x310   : > { %1547 = vst [vmem:[%s1874_s26 + $0x28] sm:$0xff] %v1539_v5 }
 0x313   : > { %v1511_v8 = vpop.f32.mrf.mxu3 }
 0x314   : > { %v1532_v9 = vadd.f32 %v1524_v7, %v1511_v8 }
 0x316   : > { %v1540_v10 = vmax.f32 %v1532_v9, 0.0 }
 0x318   : > { %1548 = vst [vmem:[%s1874_s26 + $0x30] sm:$0xff] %v1540_v10 }
 0x319 PF: > { %s17_s24 = sadd.s32 1, %s1787_s24  }
 0x31a   : > { %p14_p4 = scmp.ge.s32.totalorder %s17_s24, 4  }
 0x31c   :  { %16 = sbr.rel (!%p14_p4) target bundleno = 1 (0x1), region = 156 }

</bundles_post_ra>
